<compile_context>
chip_gen: v6e
topology: v6e:2x2x1
jax: 0.10.0
libtpu: 0.0.40
codegen_flags: <defaults>
</compile_context>

<pallas_src>
import functools

import jax
import jax.numpy as jnp
from jax import lax
from jax.experimental import pallas as pl
from jax.experimental.pallas import tpu as pltpu

EPS = 1e-10
BN_EPS = 1e-5


def _chain_softmax_kernel(
    x_ref,
    win_ref, bin_ref,
    w1_ref, b1_ref,
    w2_ref, b2_ref,
    wh_ref, bh_ref,
    out_ref,
    *,
    relu_in_bf16,
):
    f32 = jnp.float32
    bf16 = jnp.bfloat16

    def relu_to_bf16(h):
        # Identical results either way; bf16 ReLU halves VALU vregs on v6e/v7x,
        # f32-then-cast avoids unpack/repack on v5e.
        if relu_in_bf16:
            return jnp.maximum(h.astype(bf16), 0.0)
        return jnp.maximum(h, 0.0).astype(bf16)

    # ---- trunk MLP (eval BN folded into W/b; bf16 MXU operands, f32 acc) ----
    x = x_ref[...]                                             # (tb, 8) bf16
    h = jnp.dot(x, win_ref[...], preferred_element_type=f32) + bin_ref[...]
    h = relu_to_bf16(h)
    h = jnp.dot(h, w1_ref[...], preferred_element_type=f32) + b1_ref[...]
    h = relu_to_bf16(h)
    h = jnp.dot(h, w2_ref[...], preferred_element_type=f32) + b2_ref[...]
    h = relu_to_bf16(h)

    # ---- fused heads: one (dim, 16) bf16 matmul, f32 epilogue ----
    # y lanes: [cls0, cls1, cls2, 0,
    #           alpha0, beta0, gamma0, ab0,
    #           alpha1, beta1, gamma1, ab1,
    #           alpha2, beta2, gamma2, ab2]
    y = jnp.dot(h, wh_ref[...], preferred_element_type=f32) + bh_ref[...]

    c0 = y[:, 0:1]
    c1 = y[:, 1:2]
    c2 = y[:, 2:3]

    # component-major slabs: one column per regression head (alpha,beta,gamma,ab)
    z0 = y[:, 4:8]       # component 0
    z1 = y[:, 8:12]      # component 1
    z2 = y[:, 12:16]     # component 2

    # joint softmax over the 3 components of all 4 regression heads at once
    m = jnp.maximum(jnp.maximum(z0, z1), z2)
    e0 = jnp.exp(z0 - m)
    e1 = jnp.exp(z1 - m)
    e2 = jnp.exp(z2 - m)
    inv = pl.reciprocal(e0 + e1 + e2, approx=True)
    p0 = e0 * inv
    p1 = e1 * inv
    p2 = e2 * inv

    # ---- argmax over 3 classes (first-max convention, matches torch.argmax) ----
    is0 = (c0 >= c1) & (c0 >= c2)
    is1 = jnp.logical_not(is0) & (c1 >= c2)
    is01 = is0 | is1

    third = jnp.float32(1.0 / 3.0)
    eps = jnp.float32(EPS)

    lane = lax.broadcasted_iota(jnp.int32, (1, 4), 1)
    beta_lane = lane == 1
    gamma_lane = lane == 2
    ab_lane = lane == 3

    # abundance columns (lane 3 of each slab, untouched by the 1/3 masking);
    # renorm reciprocal issues on the (idle) EUP slot.
    ab0 = p0[:, 3:4]
    ab1 = p1[:, 3:4]
    ab2 = p2[:, 3:4]
    inv01 = pl.reciprocal(ab0 + ab1, approx=True)
    # class 0 -> [1, EPS, EPS]; class 1 -> renorm first two, EPS last; class 2 -> unchanged
    ab0_new = jnp.where(is0, 1.0, jnp.where(is1, ab0 * inv01, ab0))
    ab1_new = jnp.where(is0, eps, jnp.where(is1, ab1 * inv01, ab1))
    ab2_new = jnp.where(is01, eps, ab2)

    # merged "replace with 1/3" mask (beta for classes 0/1, gamma for class 1),
    # shared by all three component slabs -> ONE select per slab
    third_mask = (is01 & beta_lane) | (is1 & gamma_lane)
    p0 = jnp.where(third_mask, third, p0)
    p1 = jnp.where(third_mask, third, p1)
    p2 = jnp.where(third_mask, third, p2)
    # ONE abundance select per slab
    p0 = jnp.where(ab_lane, ab0_new, p0)
    p1 = jnp.where(ab_lane, ab1_new, p1)
    p2 = jnp.where(ab_lane, ab2_new, p2)

    # lane-sliced stores into the (tb, 16) output block (no concatenate)
    out_ref[:, 0:4] = y[:, 0:4]
    out_ref[:, 4:8] = p0
    out_ref[:, 8:12] = p1
    out_ref[:, 12:16] = p2


def _bn_scale_shift(p):
    s = p["gamma"] / jnp.sqrt(p["var"] + BN_EPS)
    t = p["beta"] - p["mean"] * s
    return s, t


def _fold_bn_after(scale, shift, w, b):
    """Fold an eval-mode BatchNorm applied AFTER y = x @ w + b."""
    return w * scale[None, :], b * scale + shift


def _round_up(n, m):
    return ((n + m - 1) // m) * m


def _cdiv(a, b):
    return -(-a // b)


def _choose_tiling(B, tb_max, min_split_tile=1024):
    """Pick (tile_rows, padded_batch, num_tiles).

    Once the padded batch is large enough, keep the tile count even so the
    "parallel" grid axis can be sharded across both v7x TensorCores.
    """
    Bp8 = _round_up(max(B, 1), 8)
    n = max(1, _cdiv(Bp8, tb_max))
    if Bp8 >= 2 * min_split_tile:
        if n < 2:
            n = 2
        if n % 2:
            n += 1
    tb = _round_up(_cdiv(Bp8, n), 8)
    return tb, tb * n, n


def chain_softmax_forward(x, params, *, tb=2048):
    """x: (B, 8) float32.  Returns (class_out (B, 3), regression_out (B, 12))."""
    B, F = x.shape
    dim = params["input_linear"]["w"].shape[1]

    # ---- fold all eval-mode BatchNorms into the linears (exact affine) ----
    sf, tf = _bn_scale_shift(params["bn_first"])      # applied BEFORE input_linear
    si, ti = _bn_scale_shift(params["input_bn"])      # applied AFTER input_linear
    w_in = sf[:, None] * params["input_linear"]["w"]
    b_in = tf @ params["input_linear"]["w"] + params["input_linear"]["b"]
    w_in, b_in = _fold_bn_after(si, ti, w_in, b_in)

    s1, t1 = _bn_scale_shift(params["bn1"])
    w1, b1 = _fold_bn_after(s1, t1, params["linear1"]["w"], params["linear1"]["b"])
    s2, t2 = _bn_scale_shift(params["bn2"])
    w2, b2 = _fold_bn_after(s2, t2, params["linear2"]["w"], params["linear2"]["b"])

    sc, tc = _bn_scale_shift(params["bn_cls"])
    wcls, bcls = _fold_bn_after(sc, tc, params["final_linear"]["w"], params["final_linear"]["b"])
    sa, ta = _bn_scale_shift(params["bn_alpha"])
    wa, ba = _fold_bn_after(sa, ta, params["reg_alpha"]["w"], params["reg_alpha"]["b"])
    sb, tbeta = _bn_scale_shift(params["bn_beta"])
    wb, bb = _fold_bn_after(sb, tbeta, params["reg_beta"]["w"], params["reg_beta"]["b"])
    sg, tg = _bn_scale_shift(params["bn_gamma"])
    wg, bg = _fold_bn_after(sg, tg, params["reg_gamma"]["w"], params["reg_gamma"]["b"])
    sab, tab = _bn_scale_shift(params["bn_abundance"])
    wab, bab = _fold_bn_after(sab, tab, params["reg_abundance"]["w"], params["reg_abundance"]["b"])

    # ---- fuse the five N=3 heads into one (dim, 16) matmul.  Regression-head
    # columns are interleaved component-major so the kernel softmaxes all four
    # heads with shared 4-wide vector ops. ----
    head_w = jnp.stack([wa, wb, wg, wab], axis=-1).reshape(dim, 12)
    head_b = jnp.stack([ba, bb, bg, bab], axis=-1).reshape(12)
    wh = jnp.concatenate([wcls, jnp.zeros((dim, 1), jnp.float32), head_w], axis=1)
    bh = jnp.concatenate([bcls, jnp.zeros((1,), jnp.float32), head_b])

    # bf16 MXU operands for all matmuls (f32 accumulation in-kernel); biases f32
    weights = [
        w_in.astype(jnp.bfloat16), b_in.reshape(1, -1).astype(jnp.float32),
        w1.astype(jnp.bfloat16), b1.reshape(1, -1).astype(jnp.float32),
        w2.astype(jnp.bfloat16), b2.reshape(1, -1).astype(jnp.float32),
        wh.astype(jnp.bfloat16), bh.reshape(1, -1).astype(jnp.float32),
    ]

    # ---- batch tiling: large tiles, even tile count for big batches (v7x) ----
    tb_eff, Bp, n_tiles = _choose_tiling(B, tb)
    x_p = x.astype(jnp.bfloat16)
    if Bp != B:
        x_p = jnp.pad(x_p, ((0, Bp - B), (0, 0)))

    # bf16 ReLU on chips with packed-bf16 VALUs (v6e/v7x); f32 ReLU otherwise.
    try:
        kind = jax.devices()[0].device_kind.lower()
    except Exception:
        kind = ""
    relu_in_bf16 = any(g in kind for g in ("v6", "v7"))

    def full_spec(shape):
        nd = len(shape)
        return pl.BlockSpec(shape, lambda i, _nd=nd: (0,) * _nd)

    in_specs = [pl.BlockSpec((tb_eff, F), lambda i: (i, 0))]
    in_specs += [full_spec(w.shape) for w in weights]
    out_specs = pl.BlockSpec((tb_eff, 16), lambda i: (i, 0))
    out_shape = jax.ShapeDtypeStruct((Bp, 16), jnp.float32)

    # VMEM budget: ~12 live (tb,128) f32 intermediates + double-buffered,
    # lane-padded input/output blocks + weights; clamp to a safe ceiling.
    interm = 12 * tb_eff * 128 * 4
    bufs = 2 * tb_eff * 128 * (2 + 4) + (2 << 20)
    vmem_limit = int(min(max(32 << 20, interm + bufs + (4 << 20)), 40 << 20))

    weight_bytes = sum(int(w.size) * w.dtype.itemsize for w in weights)
    cost = pl.CostEstimate(
        flops=int(2 * Bp * dim * (F + dim + dim + 16)),
        transcendentals=int(14 * Bp),
        bytes_accessed=int(Bp * F * 2 + weight_bytes + Bp * 16 * 4),
    )

    out = pl.pallas_call(
        functools.partial(_chain_softmax_kernel, relu_in_bf16=relu_in_bf16),
        grid=(n_tiles,),
        in_specs=in_specs,
        out_specs=out_specs,
        out_shape=out_shape,
        compiler_params=pltpu.CompilerParams(
            dimension_semantics=("parallel",),
            vmem_limit_bytes=vmem_limit),
        cost_estimate=cost,
    )(x_p, *weights)

    out = out[:B]
    class_out = out[:, 0:3]
    # de-interleave [component-major x 4 heads] -> [alpha(3), beta(3), gamma(3), abund(3)]
    regression_out = jnp.transpose(out[:, 4:16].reshape(B, 3, 4), (0, 2, 1)).reshape(B, 12)
    return class_out, regression_out


def init_params(key, dim=128):
    """Deterministic synthetic parameters matching ChainSoftmax.__init__ shapes."""
    keys = iter(jax.random.split(key, 64))

    def linear(din, dout):
        return {
            "w": 0.1 * jax.random.normal(next(keys), (din, dout), jnp.float32),
            "b": 0.1 * jax.random.normal(next(keys), (dout,), jnp.float32),
        }

    def bn(d):
        return {
            "gamma": 1.0 + 0.1 * jax.random.normal(next(keys), (d,), jnp.float32),
            "beta": 0.1 * jax.random.normal(next(keys), (d,), jnp.float32),
            "mean": 0.1 * jax.random.normal(next(keys), (d,), jnp.float32),
            "var": jax.random.uniform(next(keys), (d,), jnp.float32, 0.5, 1.5),
        }

    return {
        "bn_first": bn(8),
        "input_linear": linear(8, dim),
        "input_bn": bn(dim),
        "linear1": linear(dim, dim),
        "bn1": bn(dim),
        "linear2": linear(dim, dim),
        "bn2": bn(dim),
        "final_linear": linear(dim, 3),
        "bn_cls": bn(3),
        "reg_alpha": linear(dim, 3),
        "bn_alpha": bn(3),
        "reg_beta": linear(dim, 3),
        "bn_beta": bn(3),
        "reg_gamma": linear(dim, 3),
        "bn_gamma": bn(3),
        "reg_abundance": linear(dim, 3),
        "bn_abundance": bn(3),
    }


if __name__ == "__main__":
    key = jax.random.PRNGKey(0)
    kp, kx = jax.random.split(key)
    dim = 128
    B = 64  # small batch; padded/tiled automatically

    params = init_params(kp, dim=dim)
    x = jax.random.normal(kx, (B, 8), jnp.float32)

    class_out, regression_out = chain_softmax_forward(x, params)
    jax.block_until_ready((class_out, regression_out))

    assert class_out.shape == (B, 3)
    assert regression_out.shape == (B, 12)
    print("KERNEL_OK")
</pallas_src>

<mosaic_0001>
module attributes {stable_mosaic.version = 11 : i64} {
  func.func @_chain_softmax_kernel(%arg0: i32, %arg1: memref<64x8xbf16, #tpu.memory_space<vmem>>, %arg2: memref<8x128xbf16, #tpu.memory_space<vmem>>, %arg3: memref<1x128xf32, #tpu.memory_space<vmem>>, %arg4: memref<128x128xbf16, #tpu.memory_space<vmem>>, %arg5: memref<1x128xf32, #tpu.memory_space<vmem>>, %arg6: memref<128x128xbf16, #tpu.memory_space<vmem>>, %arg7: memref<1x128xf32, #tpu.memory_space<vmem>>, %arg8: memref<128x16xbf16, #tpu.memory_space<vmem>>, %arg9: memref<1x16xf32, #tpu.memory_space<vmem>>, %arg10: memref<64x16xf32, #tpu.memory_space<vmem>>) attributes {dimension_semantics = [#tpu.dimension_semantics<parallel>], iteration_bounds = array<i64: 1>, scalar_prefetch = 0 : i64, scratch_operands = 0 : i64, tpu.core_type = #tpu.core_type<tc>, window_params = [{transform_indices = @transform_0, window_bounds = array<i64: 64, 8>}, {pipeline_mode = #tpu.pipeline_mode<synchronous>, transform_indices = @transform_1, window_bounds = array<i64: 8, 128>}, {pipeline_mode = #tpu.pipeline_mode<synchronous>, transform_indices = @transform_2, window_bounds = array<i64: 1, 128>}, {pipeline_mode = #tpu.pipeline_mode<synchronous>, transform_indices = @transform_3, window_bounds = array<i64: 128, 128>}, {pipeline_mode = #tpu.pipeline_mode<synchronous>, transform_indices = @transform_4, window_bounds = array<i64: 1, 128>}, {pipeline_mode = #tpu.pipeline_mode<synchronous>, transform_indices = @transform_5, window_bounds = array<i64: 128, 128>}, {pipeline_mode = #tpu.pipeline_mode<synchronous>, transform_indices = @transform_6, window_bounds = array<i64: 1, 128>}, {pipeline_mode = #tpu.pipeline_mode<synchronous>, transform_indices = @transform_7, window_bounds = array<i64: 128, 16>}, {pipeline_mode = #tpu.pipeline_mode<synchronous>, transform_indices = @transform_8, window_bounds = array<i64: 1, 16>}, {transform_indices = @transform_9, window_bounds = array<i64: 64, 16>}]} {
    %c0 = arith.constant 0 : index
    %c0_0 = arith.constant 0 : index
    %0 = vector.load %arg1[%c0, %c0_0] : memref<64x8xbf16, #tpu.memory_space<vmem>>, vector<64x8xbf16>
    %c0_1 = arith.constant 0 : index
    %c0_2 = arith.constant 0 : index
    %1 = vector.load %arg2[%c0_1, %c0_2] : memref<8x128xbf16, #tpu.memory_space<vmem>>, vector<8x128xbf16>
    %cst = arith.constant dense<0.000000e+00> : vector<64x128xf32>
    %2 = tpu.matmul %0, %1, %cst {dimension_numbers = #tpu.dot_dimension_numbers<[1], [0], [0], [1], [0, 0, 1, 1], [], []>} : vector<64x8xbf16>, vector<8x128xbf16>, vector<64x128xf32> -> vector<64x128xf32>
    %c0_3 = arith.constant 0 : index
    %c0_4 = arith.constant 0 : index
    %3 = vector.load %arg3[%c0_3, %c0_4] : memref<1x128xf32, #tpu.memory_space<vmem>>, vector<1x128xf32>
    %4 = vector.broadcast %3 : vector<1x128xf32> to vector<64x128xf32>
    %5 = arith.addf %2, %4 : vector<64x128xf32>
    %cst_5 = arith.constant 0.000000e+00 : f32
    %6 = vector.broadcast %cst_5 : f32 to vector<64x128xf32>
    %7 = arith.maximumf %5, %6 : vector<64x128xf32>
    %8 = arith.truncf %7 : vector<64x128xf32> to vector<64x128xbf16>
    %c0_6 = arith.constant 0 : index
    %c0_7 = arith.constant 0 : index
    %9 = vector.load %arg4[%c0_6, %c0_7] : memref<128x128xbf16, #tpu.memory_space<vmem>>, vector<128x128xbf16>
    %cst_8 = arith.constant dense<0.000000e+00> : vector<64x128xf32>
    %10 = tpu.matmul %8, %9, %cst_8 {dimension_numbers = #tpu.dot_dimension_numbers<[1], [0], [0], [1], [0, 0, 1, 1], [], []>} : vector<64x128xbf16>, vector<128x128xbf16>, vector<64x128xf32> -> vector<64x128xf32>
    %c0_9 = arith.constant 0 : index
    %c0_10 = arith.constant 0 : index
    %11 = vector.load %arg5[%c0_9, %c0_10] : memref<1x128xf32, #tpu.memory_space<vmem>>, vector<1x128xf32>
    %12 = vector.broadcast %11 : vector<1x128xf32> to vector<64x128xf32>
    %13 = arith.addf %10, %12 : vector<64x128xf32>
    %cst_11 = arith.constant 0.000000e+00 : f32
    %14 = vector.broadcast %cst_11 : f32 to vector<64x128xf32>
    %15 = arith.maximumf %13, %14 : vector<64x128xf32>
    %16 = arith.truncf %15 : vector<64x128xf32> to vector<64x128xbf16>
    %c0_12 = arith.constant 0 : index
    %c0_13 = arith.constant 0 : index
    %17 = vector.load %arg6[%c0_12, %c0_13] : memref<128x128xbf16, #tpu.memory_space<vmem>>, vector<128x128xbf16>
    %cst_14 = arith.constant dense<0.000000e+00> : vector<64x128xf32>
    %18 = tpu.matmul %16, %17, %cst_14 {dimension_numbers = #tpu.dot_dimension_numbers<[1], [0], [0], [1], [0, 0, 1, 1], [], []>} : vector<64x128xbf16>, vector<128x128xbf16>, vector<64x128xf32> -> vector<64x128xf32>
    %c0_15 = arith.constant 0 : index
    %c0_16 = arith.constant 0 : index
    %19 = vector.load %arg7[%c0_15, %c0_16] : memref<1x128xf32, #tpu.memory_space<vmem>>, vector<1x128xf32>
    %20 = vector.broadcast %19 : vector<1x128xf32> to vector<64x128xf32>
    %21 = arith.addf %18, %20 : vector<64x128xf32>
    %cst_17 = arith.constant 0.000000e+00 : f32
    %22 = vector.broadcast %cst_17 : f32 to vector<64x128xf32>
    %23 = arith.maximumf %21, %22 : vector<64x128xf32>
    %24 = arith.truncf %23 : vector<64x128xf32> to vector<64x128xbf16>
    %c0_18 = arith.constant 0 : index
    %c0_19 = arith.constant 0 : index
    %25 = vector.load %arg8[%c0_18, %c0_19] : memref<128x16xbf16, #tpu.memory_space<vmem>>, vector<128x16xbf16>
    %cst_20 = arith.constant dense<0.000000e+00> : vector<64x16xf32>
    %26 = tpu.matmul %24, %25, %cst_20 {dimension_numbers = #tpu.dot_dimension_numbers<[1], [0], [0], [1], [0, 0, 1, 1], [], []>} : vector<64x128xbf16>, vector<128x16xbf16>, vector<64x16xf32> -> vector<64x16xf32>
    %c0_21 = arith.constant 0 : index
    %c0_22 = arith.constant 0 : index
    %27 = vector.load %arg9[%c0_21, %c0_22] : memref<1x16xf32, #tpu.memory_space<vmem>>, vector<1x16xf32>
    %28 = vector.broadcast %27 : vector<1x16xf32> to vector<64x16xf32>
    %29 = arith.addf %26, %28 : vector<64x16xf32>
    %30 = vector.extract_strided_slice %29 {offsets = [0, 0], sizes = [64, 1], strides = [1, 1]} : vector<64x16xf32> to vector<64x1xf32>
    %31 = vector.extract_strided_slice %29 {offsets = [0, 1], sizes = [64, 1], strides = [1, 1]} : vector<64x16xf32> to vector<64x1xf32>
    %32 = vector.extract_strided_slice %29 {offsets = [0, 2], sizes = [64, 1], strides = [1, 1]} : vector<64x16xf32> to vector<64x1xf32>
    %33 = vector.extract_strided_slice %29 {offsets = [0, 4], sizes = [64, 4], strides = [1, 1]} : vector<64x16xf32> to vector<64x4xf32>
    %34 = vector.extract_strided_slice %29 {offsets = [0, 8], sizes = [64, 4], strides = [1, 1]} : vector<64x16xf32> to vector<64x4xf32>
    %35 = vector.extract_strided_slice %29 {offsets = [0, 12], sizes = [64, 4], strides = [1, 1]} : vector<64x16xf32> to vector<64x4xf32>
    %36 = arith.maximumf %33, %34 : vector<64x4xf32>
    %37 = arith.maximumf %36, %35 : vector<64x4xf32>
    %38 = arith.subf %33, %37 : vector<64x4xf32>
    %39 = math.exp %38 : vector<64x4xf32>
    %40 = arith.subf %34, %37 : vector<64x4xf32>
    %41 = math.exp %40 : vector<64x4xf32>
    %42 = arith.subf %35, %37 : vector<64x4xf32>
    %43 = math.exp %42 : vector<64x4xf32>
    %44 = arith.addf %39, %41 : vector<64x4xf32>
    %45 = arith.addf %44, %43 : vector<64x4xf32>
    %46 = tpu.reciprocal %45 {approx = true} : vector<64x4xf32> -> vector<64x4xf32>
    %47 = arith.mulf %39, %46 : vector<64x4xf32>
    %48 = arith.mulf %41, %46 : vector<64x4xf32>
    %49 = arith.mulf %43, %46 : vector<64x4xf32>
    %50 = arith.cmpf oge, %30, %31 : vector<64x1xf32>
    %51 = arith.cmpf oge, %30, %32 : vector<64x1xf32>
    %52 = arith.andi %50, %51 : vector<64x1xi1>
    %cst_23 = arith.constant dense<true> : vector<64x1xi1>
    %53 = arith.xori %52, %cst_23 : vector<64x1xi1>
    %54 = arith.cmpf oge, %31, %32 : vector<64x1xf32>
    %55 = arith.andi %53, %54 : vector<64x1xi1>
    %56 = arith.ori %52, %55 : vector<64x1xi1>
    %57 = tpu.iota {dimensions = array<i32: 1>} : vector<1x4xi32>
    %c1_i32 = arith.constant 1 : i32
    %58 = vector.broadcast %c1_i32 : i32 to vector<1x4xi32>
    %59 = arith.cmpi eq, %57, %58 : vector<1x4xi32>
    %c2_i32 = arith.constant 2 : i32
    %60 = vector.broadcast %c2_i32 : i32 to vector<1x4xi32>
    %61 = arith.cmpi eq, %57, %60 : vector<1x4xi32>
    %c3_i32 = arith.constant 3 : i32
    %62 = vector.broadcast %c3_i32 : i32 to vector<1x4xi32>
    %63 = arith.cmpi eq, %57, %62 : vector<1x4xi32>
    %64 = vector.extract_strided_slice %47 {offsets = [0, 3], sizes = [64, 1], strides = [1, 1]} : vector<64x4xf32> to vector<64x1xf32>
    %65 = vector.extract_strided_slice %48 {offsets = [0, 3], sizes = [64, 1], strides = [1, 1]} : vector<64x4xf32> to vector<64x1xf32>
    %66 = vector.extract_strided_slice %49 {offsets = [0, 3], sizes = [64, 1], strides = [1, 1]} : vector<64x4xf32> to vector<64x1xf32>
    %67 = arith.addf %64, %65 : vector<64x1xf32>
    %68 = tpu.reciprocal %67 {approx = true} : vector<64x1xf32> -> vector<64x1xf32>
    %69 = arith.mulf %64, %68 : vector<64x1xf32>
    %70 = arith.select %55, %69, %64 : vector<64x1xi1>, vector<64x1xf32>
    %cst_24 = arith.constant 1.000000e+00 : f32
    %71 = vector.broadcast %cst_24 : f32 to vector<64x1xf32>
    %72 = arith.select %52, %71, %70 : vector<64x1xi1>, vector<64x1xf32>
    %73 = arith.mulf %65, %68 : vector<64x1xf32>
    %74 = arith.select %55, %73, %65 : vector<64x1xi1>, vector<64x1xf32>
    %cst_25 = arith.constant 1.000000e-10 : f32
    %75 = vector.broadcast %cst_25 : f32 to vector<64x1xf32>
    %76 = arith.select %52, %75, %74 : vector<64x1xi1>, vector<64x1xf32>
    %cst_26 = arith.constant 1.000000e-10 : f32
    %77 = vector.broadcast %cst_26 : f32 to vector<64x1xf32>
    %78 = arith.select %56, %77, %66 : vector<64x1xi1>, vector<64x1xf32>
    %79 = vector.broadcast %56 : vector<64x1xi1> to vector<64x4xi1>
    %80 = vector.broadcast %59 : vector<1x4xi1> to vector<64x4xi1>
    %81 = arith.andi %79, %80 : vector<64x4xi1>
    %82 = vector.broadcast %55 : vector<64x1xi1> to vector<64x4xi1>
    %83 = vector.broadcast %61 : vector<1x4xi1> to vector<64x4xi1>
    %84 = arith.andi %82, %83 : vector<64x4xi1>
    %85 = arith.ori %81, %84 : vector<64x4xi1>
    %cst_27 = arith.constant 0.333333343 : f32
    %86 = vector.broadcast %cst_27 : f32 to vector<64x4xf32>
    %87 = arith.select %85, %86, %47 : vector<64x4xi1>, vector<64x4xf32>
    %cst_28 = arith.constant 0.333333343 : f32
    %88 = vector.broadcast %cst_28 : f32 to vector<64x4xf32>
    %89 = arith.select %85, %88, %48 : vector<64x4xi1>, vector<64x4xf32>
    %cst_29 = arith.constant 0.333333343 : f32
    %90 = vector.broadcast %cst_29 : f32 to vector<64x4xf32>
    %91 = arith.select %85, %90, %49 : vector<64x4xi1>, vector<64x4xf32>
    %92 = vector.shape_cast %63 : vector<1x4xi1> to vector<1x4xi1>
    %93 = vector.broadcast %92 : vector<1x4xi1> to vector<64x4xi1>
    %94 = vector.shape_cast %72 : vector<64x1xf32> to vector<64x1xf32>
    %95 = vector.broadcast %94 : vector<64x1xf32> to vector<64x4xf32>
    %96 = arith.select %93, %95, %87 : vector<64x4xi1>, vector<64x4xf32>
    %97 = vector.shape_cast %63 : vector<1x4xi1> to vector<1x4xi1>
    %98 = vector.broadcast %97 : vector<1x4xi1> to vector<64x4xi1>
    %99 = vector.shape_cast %76 : vector<64x1xf32> to vector<64x1xf32>
    %100 = vector.broadcast %99 : vector<64x1xf32> to vector<64x4xf32>
    %101 = arith.select %98, %100, %89 : vector<64x4xi1>, vector<64x4xf32>
    %102 = vector.shape_cast %63 : vector<1x4xi1> to vector<1x4xi1>
    %103 = vector.broadcast %102 : vector<1x4xi1> to vector<64x4xi1>
    %104 = vector.shape_cast %78 : vector<64x1xf32> to vector<64x1xf32>
    %105 = vector.broadcast %104 : vector<64x1xf32> to vector<64x4xf32>
    %106 = arith.select %103, %105, %91 : vector<64x4xi1>, vector<64x4xf32>
    %107 = vector.extract_strided_slice %29 {offsets = [0, 0], sizes = [64, 4], strides = [1, 1]} : vector<64x16xf32> to vector<64x4xf32>
    %c0_30 = arith.constant 0 : index
    %c0_31 = arith.constant 0 : index
    %108 = vector.load %arg10[%c0_30, %c0_31] : memref<64x16xf32, #tpu.memory_space<vmem>>, vector<64x4xf32>
    tpu.vector_store %arg10[%c0_30, %c0_31], %107 {strides = array<i32>} : memref<64x16xf32, #tpu.memory_space<vmem>>, vector<64x4xf32>,
    %c0_32 = arith.constant 0 : index
    %c4 = arith.constant 4 : index
    %109 = vector.load %arg10[%c0_32, %c4] : memref<64x16xf32, #tpu.memory_space<vmem>>, vector<64x4xf32>
    tpu.vector_store %arg10[%c0_32, %c4], %96 {strides = array<i32>} : memref<64x16xf32, #tpu.memory_space<vmem>>, vector<64x4xf32>,
    %c0_33 = arith.constant 0 : index
    %c8 = arith.constant 8 : index
    %110 = vector.load %arg10[%c0_33, %c8] : memref<64x16xf32, #tpu.memory_space<vmem>>, vector<64x4xf32>
    tpu.vector_store %arg10[%c0_33, %c8], %101 {strides = array<i32>} : memref<64x16xf32, #tpu.memory_space<vmem>>, vector<64x4xf32>,
    %c0_34 = arith.constant 0 : index
    %c12 = arith.constant 12 : index
    %111 = vector.load %arg10[%c0_34, %c12] : memref<64x16xf32, #tpu.memory_space<vmem>>, vector<64x4xf32>
    tpu.vector_store %arg10[%c0_34, %c12], %106 {strides = array<i32>} : memref<64x16xf32, #tpu.memory_space<vmem>>, vector<64x4xf32>,
    return
  }
  func.func @transform_0(%arg0: i32) -> (i32, i32) {
    %c0_i32 = arith.constant 0 : i32
    %c0_i32_0 = arith.constant 0 : i32
    return %arg0, %c0_i32 : i32, i32
  }
  func.func @transform_1(%arg0: i32) -> (i32, i32) {
    %c0_i32 = arith.constant 0 : i32
    %c0_i32_0 = arith.constant 0 : i32
    %c0_i32_1 = arith.constant 0 : i32
    return %c0_i32, %c0_i32_0 : i32, i32
  }
  func.func @transform_2(%arg0: i32) -> (i32, i32) {
    %c0_i32 = arith.constant 0 : i32
    %c0_i32_0 = arith.constant 0 : i32
    %c0_i32_1 = arith.constant 0 : i32
    return %c0_i32, %c0_i32_0 : i32, i32
  }
  func.func @transform_3(%arg0: i32) -> (i32, i32) {
    %c0_i32 = arith.constant 0 : i32
    %c0_i32_0 = arith.constant 0 : i32
    %c0_i32_1 = arith.constant 0 : i32
    return %c0_i32, %c0_i32_0 : i32, i32
  }
  func.func @transform_4(%arg0: i32) -> (i32, i32) {
    %c0_i32 = arith.constant 0 : i32
    %c0_i32_0 = arith.constant 0 : i32
    %c0_i32_1 = arith.constant 0 : i32
    return %c0_i32, %c0_i32_0 : i32, i32
  }
  func.func @transform_5(%arg0: i32) -> (i32, i32) {
    %c0_i32 = arith.constant 0 : i32
    %c0_i32_0 = arith.constant 0 : i32
    %c0_i32_1 = arith.constant 0 : i32
    return %c0_i32, %c0_i32_0 : i32, i32
  }
  func.func @transform_6(%arg0: i32) -> (i32, i32) {
    %c0_i32 = arith.constant 0 : i32
    %c0_i32_0 = arith.constant 0 : i32
    %c0_i32_1 = arith.constant 0 : i32
    return %c0_i32, %c0_i32_0 : i32, i32
  }
  func.func @transform_7(%arg0: i32) -> (i32, i32) {
    %c0_i32 = arith.constant 0 : i32
    %c0_i32_0 = arith.constant 0 : i32
    %c0_i32_1 = arith.constant 0 : i32
    return %c0_i32, %c0_i32_0 : i32, i32
  }
  func.func @transform_8(%arg0: i32) -> (i32, i32) {
    %c0_i32 = arith.constant 0 : i32
    %c0_i32_0 = arith.constant 0 : i32
    %c0_i32_1 = arith.constant 0 : i32
    return %c0_i32, %c0_i32_0 : i32, i32
  }
  func.func @transform_9(%arg0: i32) -> (i32, i32) {
    %c0_i32 = arith.constant 0 : i32
    %c0_i32_0 = arith.constant 0 : i32
    return %arg0, %c0_i32 : i32, i32
  }
}

</mosaic_0001>

<bundles_post_ra>
// kernel: tpu_custom_call.1
= control target key start
LH: loop header
LB: loop body
LE: loop exit
PB: predicated region body
PF: predicated region fallthrough
CT: control target
= control target key end

     0   :  { %14 = vsyncpa [#allocation3], 0  ;;  %s2208_s30 = smov [#allocation2]   ;;  %s3792_s0 = inlined_call_operand.vmem [shape: bf16[64,8], index: 0, kind: input, shape index: {}]   ;;  %s3793_s1 = inlined_call_operand.vmem [shape: bf16[8,128], index: 1, kind: input, shape index: {}]   ;;  %s3794_s2 = inlined_call_operand.vmem [shape: f32[1,128], index: 2, kind: input, shape index: {}]   ;;  %s3795_s3 = inlined_call_operand.vmem [shape: bf16[128,128], index: 3, kind: input, shape index: {}]   ;;  %s3796_s4 = inlined_call_operand.vmem [shape: f32[1,128], index: 4, kind: input, shape index: {}]   ;;  %s3797_s5 = inlined_call_operand.hbm [shape: bf16[128,128], index: 5, kind: input, shape index: {}]   ;;  %s3798_s6 = inlined_call_operand.vmem [shape: f32[1,128], index: 6, kind: input, shape index: {}]   ;;  %s3799_s7 = inlined_call_operand.vmem [shape: bf16[128,16], index: 7, kind: input, shape index: {}]   ;;  %s3800_s8 = inlined_call_operand.vmem [shape: f32[1,16], index: 8, kind: input, shape index: {}]   ;;  %s3801_s9 = inlined_call_operand.vmem [shape: f32[64,16], index: 9, kind: output, shape index: {}]  }
   0x1   :  { %s30_s10 = sshll.u32 %s2208_s30, 4  ;;  %s31_s10 = int_to_ptr.vmem [resolvable:$true] %s30_s10 }
   0x2   :  { %s2194_s11 = scalar_lea.vmem %s31_s10, 1024  ;;  %p2199_p1 = scmp.lt.s32.totalorder %s31_s10, %s31_s10 }
   0x3   :  { %p2195_p0 = scmp.ne.s32.totalorder %s31_s10, %s2194_s11  ;;  %p2200_p2 = scmp.lt.s32.totalorder %s2194_s11, %s2194_s11 }
   0x5   :  { %p2201_p3 = por %p2200_p2, %p2199_p1 }
   0x7   :  { %p2202_p4 = pnand %p2201_p3, %p2195_p0 }
   0x9   :  { %2205 = shalt.err (!%p2202_p4)
}
   0xa   :  { %s2209_s12 = smov 64   ;;  %s2210_s13 = smov 4  }
   0xb   :  { %36 = dma.hbm_to_vmem [thread:$0]  %s3797_s5, 1024, %s31_s10, [#allocation3], %s2209_s12, %s2209_s12, %s2210_s13  }
   0xc   :  { %2206 = dma.done.wait [#allocation3], 1024  }
   0xd   :  { %2207 = vsyncadd [#allocation3], 4294966272  ;;  %vm96_vm0 = vcmask 1043456   ;;  %vm83_vm1 = vcmask 64512   ;;  %v55_v0 = vld [vmem:[%s3793_s1] sm:$0xf] }
   0xe   :  { %2060 = vmatprep.subr.msk.bf16.mxu0 %vm96_vm0, %v55_v0  ;;  %v98_v1 = vsel %vm96_vm0, %v55_v0, 0  ;;  %v2078_v2 = vld [vmem:[%s3792_s0] sm:$0xff]   ;;  %v2079_v3 = vld [vmem:[%s3792_s0 + $0x8] sm:$0xff]   ;;  %v2080_v4 = vld [vmem:[%s3792_s0 + $0x10] sm:$0xff]   ;;  %vm1748_vm2 = vcmask 31744   ;;  %s2211_s15 = smov 120  }
   0xf   :  { %1963 = vmatpush3.bf16.msra.mxu0 %v98_v1  ;;  %1964 = vmatprep.mubr.msk.bf16.mxu0 %vm83_vm1, %v2078_v2  ;;  %v2082_v5 = vld [vmem:[%s3795_s3 + $0x38] sm:$0xff]   ;;  %v2083_v6 = vld [vmem:[%s3795_s3 + $0x30] sm:$0xff]   ;;  %v2084_v8 = vld [vmem:[%s3795_s3 + $0x28] sm:$0xff]   ;;  %s2212_s16 = smov 124   ;;  %s2213_s28 = smov 8  }
  0x10   :  { %1972 = vmatprep.subr.bf16.mxu1 %v2082_v5  ;;  %v2081_v7 = vld [vmem:[%s3792_s0 + $0x18] sm:$0xff]   ;;  %v2085_v9 = vld [vmem:[%s3795_s3 + $0x20] sm:$0xff]   ;;  %v2087_v11 = vld [vmem:[%s3795_s3 + $0x10] sm:$0xff]   ;;  %s2216_s29 = smov 126   ;;  %s2217_s30 = smov 121  }
  0x11   :  { %1973 = vmatpush3.bf16.msra.mxu1 %v2082_v5  ;;  %v2086_v10 = vld [vmem:[%s3795_s3 + $0x18] sm:$0xff]   ;;  %v2088_v12 = vld [vmem:[%s3795_s3 + $0x8] sm:$0xff]   ;;  %v2089_v13 = vld [vmem:[%s3795_s3] sm:$0xff]   ;;  %s2218_s10 = smov 117   ;;  %s2219_s11 = smov 113  }
  0x12   :  { %1965 = vmatmul.mubr.msk.bf16.vlgmr.msra.gmra.mxu0 %vm83_vm1, %v2079_v3  ;;  %1974 = vmatprep.subr.bf16.mxu1 %v2083_v6  ;;  %v2090_v14 = vld [vmem:[#allocation2 + $0x38] sm:$0xff]   ;;  %v2091_v15 = vld [vmem:[#allocation2 + $0x30] sm:$0xff]   ;;  %v2092_v16 = vld [vmem:[#allocation2 + $0x28] sm:$0xff]   ;;  %s2221_s12 = smov 116   ;;  %s2222_s0 = smov 12  }
  0x13   :  { %1968 = vmatprep.mubr.msk.bf16.mxu0 %vm83_vm1, %v2080_v4  ;;  %1996 = vmatprep.subr.bf16.mxu0 %v2090_v14  ;;  %v2093_v17 = vld [vmem:[#allocation2 + $0x20] sm:$0xff]   ;;  %v2094_v18 = vld [vmem:[#allocation2 + $0x18] sm:$0xff]   ;;  %v2095_v48 = vld [vmem:[#allocation2 + $0x10] sm:$0xff]  }
  0x14   :  { %1997 = vmatpush3.bf16.msra.mxu0 %v2090_v14  ;;  %v1885_v21 = vld [vmem:[%s3794_s2] ss:$0 sm:$0xff]  ;;  %v2096_v49 = vld [vmem:[#allocation2 + $0x8] sm:$0xff]   ;;  %v2098_v51 = vld [vmem:[%s3799_s7 + $0x38] sm:$0xff]  }
  0x15   :  { %1975 = vmatpush3.bf16.msra.mxu1 %v2083_v6  ;;  %1998 = vmatprep.subr.bf16.mxu0 %v2091_v15  ;;  %v2097_v50 = vld [vmem:[#allocation2] sm:$0xff]   ;;  %v2099_v52 = vld [vmem:[%s3799_s7 + $0x30] sm:$0xff]   ;;  %v2100_v53 = vld [vmem:[%s3799_s7 + $0x28] sm:$0xff]  }
  0x16   :  { %1976 = vmatprep.subr.bf16.mxu1 %v2084_v8  ;;  %v2101_v54 = vld [vmem:[%s3799_s7 + $0x20] sm:$0xff]   ;;  %v2102_v55 = vld [vmem:[%s3799_s7 + $0x18] sm:$0xff]  }
  0x17   :  { %v1894_v58 = vld [vmem:[%s3796_s4] ss:$0 sm:$0xff]  ;;  %s2215_s4 = smov 127  }
  0x18   :  { %1999 = vmatpush3.bf16.msra.mxu0 %v2091_v15 }
  0x19   :  { %1977 = vmatpush3.bf16.msra.mxu1 %v2084_v8  ;;  %2000 = vmatprep.subr.bf16.mxu0 %v2092_v16 }
  0x1a   :  { %1969 = vmatmul.mubr.msk.bf16.gmra.mxu0 %vm83_vm1, %v2081_v7  ;;  %1978 = vmatprep.subr.bf16.mxu1 %v2085_v9 }
  0x1c   :  { %2001 = vmatpush3.bf16.msra.mxu0 %v2092_v16 }
  0x1d   :  { %1979 = vmatpush3.bf16.msra.mxu1 %v2085_v9  ;;  %2002 = vmatprep.subr.bf16.mxu0 %v2093_v17 }
  0x1e   :  { %1980 = vmatprep.subr.bf16.mxu1 %v2086_v10 }
  0x20   :  { %2003 = vmatpush3.bf16.msra.mxu0 %v2093_v17 }
  0x21   :  { %1981 = vmatpush3.bf16.msra.mxu1 %v2086_v10  ;;  %2004 = vmatprep.subr.bf16.mxu0 %v2094_v18 }
  0x22   :  { %1982 = vmatprep.subr.bf16.mxu1 %v2087_v11 }
  0x24   :  { %2005 = vmatpush3.bf16.msra.mxu0 %v2094_v18 }
  0x25   :  { %1983 = vmatpush3.bf16.msra.mxu1 %v2087_v11  ;;  %2006 = vmatprep.subr.bf16.mxu0 %v2095_v48 }
  0x26   :  { %1984 = vmatprep.subr.bf16.mxu1 %v2088_v12 }
  0x28   :  { %2007 = vmatpush3.bf16.msra.mxu0 %v2095_v48 }
  0x29   :  { %1985 = vmatpush3.bf16.msra.mxu1 %v2088_v12  ;;  %2008 = vmatprep.subr.bf16.mxu0 %v2096_v49 }
  0x2a   :  { %1986 = vmatprep.subr.bf16.mxu1 %v2089_v13 }
  0x2c   :  { %2009 = vmatpush3.bf16.msra.mxu0 %v2096_v49 }
  0x2d   :  { %1987 = vmatpush3.bf16.msra.mxu1 %v2089_v13  ;;  %2010 = vmatprep.subr.bf16.mxu0 %v2097_v50 }
  0x2e   :  { %2044 = vmatprep.subr.bf16.mxu1 %v2098_v51 }
  0x30   :  { %2011 = vmatpush3.bf16.msra.mxu0 %v2097_v50 }
  0x31   :  { %2020 = vmatprep.subr.bf16.mxu0 %v2098_v51 }
  0xd2   :  { %v1966_v19 = vpop.f32.mrf.mxu0 }
  0xd3   :  { %v143_v25 = vadd.f32 %v1966_v19, %v1885_v21 }
  0xd4   :  { %v134_v20 = vpop.f32.mrf.mxu0 }
  0xd5   :  { %v135_v23 = vadd.f32 %v1885_v21, %v134_v20  ;;  %v167_v32 = vmax.f32 %v143_v25, 0.0 }
  0xd6   :  { %v1967_v22 = vpop.f32.mrf.mxu0 }
  0xd7   :  { %v146_v24 = vadd.f32 %v1967_v22, %v1885_v21  ;;  %v165_v30 = vmax.f32 %v135_v23, 0.0  ;;  %v2104_v22 = vld [vmem:[%s3799_s7 + $0x8] sm:$0xff]   ;;  %v2105_v23 = vld [vmem:[%s3799_s7] sm:$0xff]  }
  0xd8   :  { %v137_v26 = vpop.f32.mrf.mxu0 }
  0xd9   :  { %v138_v27 = vadd.f32 %v1885_v21, %v137_v26  ;;  %v168_v28 = vmax.f32 %v146_v24, 0.0  ;;  %v1903_v26 = vld [vmem:[%s3798_s6] ss:$0 sm:$0xff] }
  0xda   :  { %v1970_v29 = vpop.f32.mrf.mxu0 }
  0xdb   :  { %v166_v31 = vmax.f32 %v138_v27, 0.0  ;;  %v174_v35 = vpack.c.bf16 %v168_v28, %v167_v32  ;;  %v159_v36 = vadd.f32 %v1970_v29, %v1885_v21 }
  0xdc   :  { %v150_v33 = vpop.f32.mrf.mxu0 }
  0xdd   :  { %v173_v34 = vpack.c.bf16 %v166_v31, %v165_v30  ;;  %v151_v38 = vadd.f32 %v1885_v21, %v150_v33  ;;  %v171_v42 = vmax.f32 %v159_v36, 0.0 }
  0xde   :  { %v1971_v37 = vpop.f32.mrf.mxu0 }
  0xdf   :  { %v162_v39 = vadd.f32 %v1971_v37, %v1885_v21  ;;  %1988 = vmatprep.mubr.bf16.mxu1 %v173_v34  ;;  %v169_v44 = vmax.f32 %v151_v38, 0.0 }
  0xe0   :  { %v153_v40 = vpop.f32.mrf.mxu0  ;;  %1989 = vmatmul.mubr.bf16.vlgmr.msra.gmra.mxu1 %v174_v35 }
  0xe1   :  { %v154_v41 = vadd.f32 %v1885_v21, %v153_v40  ;;  %v172_v43 = vmax.f32 %v162_v39, 0.0  ;;  %2052 = vmatpush3.bf16.msra.mxu1 %v2098_v51  ;;  %v2103_v21 = vld [vmem:[%s3799_s7 + $0x10] sm:$0xff]  }
  0xe2   :  { %2045 = vmatprep.subr.bf16.mxu1 %v2099_v52 }
  0xe3   :  { %v170_v45 = vmax.f32 %v154_v41, 0.0  ;;  %v176_v47 = vpack.c.bf16 %v172_v43, %v171_v42 }
  0xe5   :  { %v175_v46 = vpack.c.bf16 %v170_v45, %v169_v44  ;;  %2053 = vmatpush3.bf16.msra.mxu1 %v2099_v52 }
  0xe6   :  { %2046 = vmatprep.subr.bf16.mxu1 %v2100_v53 }
  0xe7   :  { %1992 = vmatprep.mubr.bf16.mxu1 %v175_v46 }
  0xe8   :  { %1993 = vmatmul.mubr.bf16.gmra.mxu1 %v176_v47 }
  0xe9   :  { %2054 = vmatpush3.bf16.msra.mxu1 %v2100_v53 }
  0xea   :  { %2047 = vmatprep.subr.bf16.mxu1 %v2101_v54 }
  0xed   :  { %2055 = vmatpush3.bf16.msra.mxu1 %v2101_v54 }
  0xee   :  { %2048 = vmatprep.subr.bf16.mxu1 %v2102_v55 }
  0xf1   :  { %2056 = vmatpush3.bf16.msra.mxu1 %v2102_v55 }
  0xf2   :  { %2049 = vmatprep.subr.bf16.mxu1 %v2103_v21 }
  0xf5   :  { %2057 = vmatpush3.bf16.msra.mxu1 %v2103_v21 }
  0xf6   :  { %2050 = vmatprep.subr.bf16.mxu1 %v2104_v22 }
  0xf9   :  { %2058 = vmatpush3.bf16.msra.mxu1 %v2104_v22 }
  0xfa   :  { %2051 = vmatprep.subr.bf16.mxu1 %v2105_v23 }
  0xfd   :  { %2059 = vmatpush3.bf16.msra.mxu1 %v2105_v23 }
 0x1a0   :  { %v1990_v56 = vpop.f32.mrf.mxu1 }
 0x1a1   :  { %v291_v62 = vadd.f32 %v1990_v56, %v1894_v58 }
 0x1a2   :  { %v282_v57 = vpop.f32.mrf.mxu1 }
 0x1a3   :  { %v283_v60 = vadd.f32 %v1894_v58, %v282_v57  ;;  %v315_v5 = vmax.f32 %v291_v62, 0.0 }
 0x1a4   :  { %v1991_v59 = vpop.f32.mrf.mxu1 }
 0x1a5   :  { %v294_v61 = vadd.f32 %v1991_v59, %v1894_v58  ;;  %v313_v3 = vmax.f32 %v283_v60, 0.0 }
 0x1a6   :  { %v285_v63 = vpop.f32.mrf.mxu1 }
 0x1a7   :  { %v286_v0 = vadd.f32 %v1894_v58, %v285_v63  ;;  %v316_v1 = vmax.f32 %v294_v61, 0.0 }
 0x1a8   :  { %v1994_v2 = vpop.f32.mrf.mxu1 }
 0x1a9   :  { %v314_v4 = vmax.f32 %v286_v0, 0.0  ;;  %v322_v8 = vpack.c.bf16 %v316_v1, %v315_v5  ;;  %v307_v12 = vadd.f32 %v1994_v2, %v1894_v58 }
 0x1aa   :  { %v298_v6 = vpop.f32.mrf.mxu1 }
 0x1ab   :  { %v321_v7 = vpack.c.bf16 %v314_v4, %v313_v3  ;;  %v299_v10 = vadd.f32 %v1894_v58, %v298_v6  ;;  %v319_v18 = vmax.f32 %v307_v12, 0.0 }
 0x1ac   :  { %v1995_v9 = vpop.f32.mrf.mxu1 }
 0x1ad   :  { %v310_v11 = vadd.f32 %v1995_v9, %v1894_v58  ;;  %2012 = vmatprep.mubr.bf16.mxu0 %v321_v7  ;;  %v317_v16 = vmax.f32 %v299_v10, 0.0 }
 0x1ae   :  { %v301_v13 = vpop.f32.mrf.mxu1  ;;  %2013 = vmatmul.mubr.bf16.vlgmr.msra.gmra.mxu0 %v322_v8 }
 0x1af   :  { %v302_v14 = vadd.f32 %v1894_v58, %v301_v13  ;;  %2021 = vmatpush3.bf16.msra.mxu0 %v2098_v51  ;;  %v320_v15 = vmax.f32 %v310_v11, 0.0 }
 0x1b0   :  { %2022 = vmatprep.subr.bf16.mxu0 %v2099_v52 }
 0x1b1   :  { %v318_v17 = vmax.f32 %v302_v14, 0.0  ;;  %v324_v20 = vpack.c.bf16 %v320_v15, %v319_v18 }
 0x1b3   :  { %v323_v19 = vpack.c.bf16 %v318_v17, %v317_v16  ;;  %2023 = vmatpush3.bf16.msra.mxu0 %v2099_v52 }
 0x1b4   :  { %2024 = vmatprep.subr.bf16.mxu0 %v2100_v53 }
 0x1b5   :  { %2016 = vmatprep.mubr.bf16.mxu0 %v323_v19 }
 0x1b6   :  { %2017 = vmatmul.mubr.bf16.gmra.mxu0 %v324_v20 }
 0x1b7   :  { %2025 = vmatpush3.bf16.msra.mxu0 %v2100_v53  ;;  %v1912_v53 = vld [vmem:[%s3800_s8] ss:$0 sm:$0xff] }
 0x1b8   :  { %2026 = vmatprep.subr.bf16.mxu0 %v2101_v54 }
 0x1bb   :  { %2027 = vmatpush3.bf16.msra.mxu0 %v2101_v54 }
 0x1bc   :  { %2028 = vmatprep.subr.bf16.mxu0 %v2102_v55 }
 0x1bf   :  { %2029 = vmatpush3.bf16.msra.mxu0 %v2102_v55 }
 0x1c0   :  { %2030 = vmatprep.subr.bf16.mxu0 %v2103_v21 }
 0x1c3   :  { %2031 = vmatpush3.bf16.msra.mxu0 %v2103_v21 }
 0x1c4   :  { %2032 = vmatprep.subr.bf16.mxu0 %v2104_v22 }
 0x1c7   :  { %2033 = vmatpush3.bf16.msra.mxu0 %v2104_v22 }
 0x1c8   :  { %2034 = vmatprep.subr.bf16.mxu0 %v2105_v23 }
 0x1cb   :  { %2035 = vmatpush3.bf16.msra.mxu0 %v2105_v23 }
 0x26e   :  { %v2014_v24 = vpop.f32.mrf.mxu0 }
 0x26f   :  { %v439_v30 = vadd.f32 %v2014_v24, %v1903_v26 }
 0x270   :  { %v430_v25 = vpop.f32.mrf.mxu0 }
 0x271   :  { %v431_v28 = vadd.f32 %v1903_v26, %v430_v25  ;;  %v463_v37 = vmax.f32 %v439_v30, 0.0 }
 0x272   :  { %v2015_v27 = vpop.f32.mrf.mxu0 }
 0x273   :  { %v442_v29 = vadd.f32 %v2015_v27, %v1903_v26  ;;  %v461_v35 = vmax.f32 %v431_v28, 0.0 }
 0x274   :  { %v433_v31 = vpop.f32.mrf.mxu0 }
 0x275   :  { %v434_v32 = vadd.f32 %v1903_v26, %v433_v31  ;;  %v464_v33 = vmax.f32 %v442_v29, 0.0 }
 0x276   :  { %v2018_v34 = vpop.f32.mrf.mxu0 }
 0x277   :  { %v462_v36 = vmax.f32 %v434_v32, 0.0  ;;  %v470_v40 = vpack.c.bf16 %v464_v33, %v463_v37  ;;  %v455_v44 = vadd.f32 %v2018_v34, %v1903_v26 }
 0x278   :  { %v446_v38 = vpop.f32.mrf.mxu0 }
 0x279   :  { %v469_v39 = vpack.c.bf16 %v462_v36, %v461_v35  ;;  %v447_v42 = vadd.f32 %v1903_v26, %v446_v38  ;;  %v467_v50 = vmax.f32 %v455_v44, 0.0 }
 0x27a   :  { %v2019_v41 = vpop.f32.mrf.mxu0 }
 0x27b   :  { %v458_v43 = vadd.f32 %v2019_v41, %v1903_v26  ;;  %2036 = vmatprep.mubr.bf16.mxu0 %v469_v39  ;;  %v465_v48 = vmax.f32 %v447_v42, 0.0 }
 0x27c   :  { %v449_v45 = vpop.f32.mrf.mxu0  ;;  %2037 = vmatmul.mubr.bf16.vlgmr.msra.gmra.mxu0 %v470_v40 }
 0x27d   :  { %v450_v46 = vadd.f32 %v1903_v26, %v449_v45  ;;  %v468_v47 = vmax.f32 %v458_v43, 0.0 }
 0x27f   :  { %v466_v49 = vmax.f32 %v450_v46, 0.0  ;;  %v472_v52 = vpack.c.bf16 %v468_v47, %v467_v50 }
 0x281   :  { %v471_v51 = vpack.c.bf16 %v466_v49, %v465_v48 }
 0x283   :  { %2040 = vmatprep.mubr.bf16.mxu1 %v471_v51 }
 0x284   :  { %2041 = vmatmul.mubr.bf16.vlgmr.msra.gmra.mxu1 %v472_v52 }
 0x33c   :  { %v2038_v54 = vpop.f32.mrf.mxu0 }
 0x33d   :  { %v2356_v55 = vadd.f32 %v2038_v54, %v1912_v53 }
 0x33e   :  { %v578_v56 = vpop.f32.mrf.mxu0 }
 0x33f   :  { %v2358_v57 = vadd.f32 %v1912_v53, %v578_v56  ;;  %653 = vrot.lane.b32.xlu0 %v2356_v55, %s2211_s15  ;;  %621 = vrot.lane.b32.xlu1 %v2356_v55, %s2212_s16  ;;  %1751 = vst.msk [vmem:[%s3801_s9 + $0x10] sm:$0xff] %vm1748_vm2, %v2356_v55 }
 0x340   :  { %v2039_v58 = vpop.f32.mrf.mxu0 }
 0x341   :  { %v2369_v59 = vadd.f32 %v2039_v58, %v1912_v53  ;;  %1749 = vst.msk [vmem:[%s3801_s9] sm:$0xff] %vm1748_vm2, %v2358_v57 }
 0x342   :  { %v581_v60 = vpop.f32.mrf.mxu0 }
 0x343   :  { %v2376_v61 = vadd.f32 %v1912_v53, %v581_v60  ;;  %623 = vrot.lane.b32.xlu1 %v2369_v59, %s2212_s16  ;;  %617 = vrot.lane.b32.xlu0 %v2358_v57, %s2212_s16  ;;  %1752 = vst.msk [vmem:[%s3801_s9 + $0x18] sm:$0xff] %vm1748_vm2, %v2369_v59 }
 0x344   :  { %v2042_v62 = vpop.f32.mrf.mxu1 }
 0x345   :  { %v2387_v63 = vadd.f32 %v2042_v62, %v1912_v53  ;;  %1750 = vst.msk [vmem:[%s3801_s9 + $0x8] sm:$0xff] %vm1748_vm2, %v2376_v61 }
 0x346   :  { %v594_v0 = vpop.f32.mrf.mxu1 }
 0x347   :  { %v2394_v1 = vadd.f32 %v1912_v53, %v594_v0  ;;  %655 = vrot.lane.b32.xlu1 %v2369_v59, %s2211_s15  ;;  %649 = vrot.lane.b32.xlu0 %v2358_v57, %s2211_s15  ;;  %1755 = vst.msk [vmem:[%s3801_s9 + $0x30] sm:$0xff] %vm1748_vm2, %v2387_v63 }
 0x348   :  { %v2043_v2 = vpop.f32.mrf.mxu1 }
 0x349   :  { %v2405_v3 = vadd.f32 %v2043_v2, %v1912_v53  ;;  %1753 = vst.msk [vmem:[%s3801_s9 + $0x20] sm:$0xff] %vm1748_vm2, %v2394_v1 }
 0x34a   :  { %v597_v4 = vpop.f32.mrf.mxu1 }
 0x34b   :  { %v2412_v5 = vadd.f32 %v1912_v53, %v597_v4  ;;  %651 = vrot.lane.b32.xlu1 %v2376_v61, %s2211_s15  ;;  %619 = vrot.lane.b32.xlu0 %v2376_v61, %s2212_s16  ;;  %1756 = vst.msk [vmem:[%s3801_s9 + $0x38] sm:$0xff] %vm1748_vm2, %v2405_v3 }
 0x34d   :  { %1754 = vst.msk [vmem:[%s3801_s9 + $0x28] sm:$0xff] %vm1748_vm2, %v2412_v5 }
 0x34f   :  { %631 = vrot.lane.b32.xlu1 %v2405_v3, %s2212_s16  ;;  %629 = vrot.lane.b32.xlu0 %v2387_v63, %s2212_s16 }
 0x353   :  { %627 = vrot.lane.b32.xlu1 %v2412_v5, %s2212_s16  ;;  %625 = vrot.lane.b32.xlu0 %v2394_v1, %s2212_s16 }
 0x357   :  { %659 = vrot.lane.b32.xlu1 %v2412_v5, %s2211_s15  ;;  %657 = vrot.lane.b32.xlu0 %v2394_v1, %s2211_s15 }
 0x35b   :  { %663 = vrot.lane.b32.xlu1 %v2405_v3, %s2211_s15  ;;  %661 = vrot.lane.b32.xlu0 %v2387_v63, %s2211_s15 }
 0x3b1   :  { %v654_v6 = vpop.permute.xlu0 %653  ;;  %v622_v7 = vpop.permute.xlu1 %621 }
 0x3b2   :  { %v643_v8 = vmax.f32 %v2356_v55, %v622_v7 }
 0x3b4   :  { %v2445_v9 = vmax.f32 %v643_v8, %v654_v6 }
 0x3b5   :  { %v624_v10 = vpop.permute.xlu1 %623  ;;  %v618_v11 = vpop.permute.xlu0 %617 }
 0x3b6   :  { %717 = vrot.lane.b32.xlu0 %v2445_v9, %s2210_s13  ;;  %v644_v12 = vmax.f32 %v2369_v59, %v624_v10  ;;  %v641_v15 = vmax.f32 %v2358_v57, %v618_v11 }
 0x3b9   :  { %v656_v13 = vpop.permute.xlu1 %655  ;;  %v650_v14 = vpop.permute.xlu0 %649 }
 0x3ba   :  { %v2451_v16 = vmax.f32 %v644_v12, %v656_v13  ;;  %765 = vrot.lane.b32.xlu0 %v2445_v9, %s2213_s28  ;;  %v2455_v17 = vmax.f32 %v641_v15, %v650_v14 }
 0x3bc   :  { %719 = vrot.lane.b32.xlu1 %v2451_v16, %s2210_s13 }
 0x3bd   :  { %v652_v18 = vpop.permute.xlu1 %651  ;;  %v620_v19 = vpop.permute.xlu0 %619 }
 0x3be   :  { %v642_v20 = vmax.f32 %v2376_v61, %v620_v19  ;;  %713 = vrot.lane.b32.xlu0 %v2455_v17, %s2210_s13 }
 0x3c0   :  { %767 = vrot.lane.b32.xlu1 %v2451_v16, %s2213_s28  ;;  %v2464_v23 = vmax.f32 %v642_v20, %v652_v18 }
 0x3c1   :  { %v632_v21 = vpop.permute.xlu1 %631  ;;  %v630_v22 = vpop.permute.xlu0 %629 }
 0x3c2   :  { %761 = vrot.lane.b32.xlu0 %v2455_v17, %s2213_s28  ;;  %v648_v28 = vmax.f32 %v2405_v3, %v632_v21  ;;  %v647_v29 = vmax.f32 %v2387_v63, %v630_v22 }
 0x3c4   :  { %715 = vrot.lane.b32.xlu1 %v2464_v23, %s2210_s13 }
 0x3c5   :  { %v628_v24 = vpop.permute.xlu1 %627  ;;  %v626_v25 = vpop.permute.xlu0 %625 }
 0x3c6   :  { %v646_v34 = vmax.f32 %v2412_v5, %v628_v24  ;;  %v645_v35 = vmax.f32 %v2394_v1, %v626_v25 }
 0x3c8   :  { %763 = vrot.lane.b32.xlu1 %v2464_v23, %s2213_s28 }
 0x3c9   :  { %v660_v26 = vpop.permute.xlu1 %659  ;;  %v658_v27 = vpop.permute.xlu0 %657 }
 0x3ca   :  { %v2484_v36 = vmax.f32 %v646_v34, %v660_v26  ;;  %v2486_v37 = vmax.f32 %v645_v35, %v658_v27 }
 0x3cd   :  { %v664_v30 = vpop.permute.xlu1 %663  ;;  %v662_v31 = vpop.permute.xlu0 %661 }
 0x3ce   :  { %v2474_v32 = vmax.f32 %v648_v28, %v664_v30  ;;  %v2476_v33 = vmax.f32 %v647_v29, %v662_v31 }
 0x3d0   :  { %727 = vrot.lane.b32.xlu1 %v2474_v32, %s2210_s13  ;;  %725 = vrot.lane.b32.xlu0 %v2476_v33, %s2210_s13 }
 0x3d4   :  { %723 = vrot.lane.b32.xlu1 %v2484_v36, %s2210_s13  ;;  %721 = vrot.lane.b32.xlu0 %v2486_v37, %s2210_s13 }
 0x3d8   :  { %771 = vrot.lane.b32.xlu1 %v2484_v36, %s2213_s28  ;;  %769 = vrot.lane.b32.xlu0 %v2486_v37, %s2213_s28 }
 0x3dc   :  { %775 = vrot.lane.b32.xlu1 %v2474_v32, %s2213_s28  ;;  %773 = vrot.lane.b32.xlu0 %v2476_v33, %s2213_s28 }
 0x428   :  { %v718_v38 = vpop.permute.xlu0 %717 }
 0x429   :  { %v739_v39 = vsub.f32 %v2356_v55, %v718_v38 }
 0x42b   :  { %v749_v40 = vmul.f32 1.442695, %v739_v39 }
 0x42c   :  { %v766_v41 = vpop.permute.xlu0 %765 }
 0x42d   :  { %2106 = vpow2.f32 %v749_v40  ;;  %v787_v42 = vsub.f32 %v2356_v55, %v766_v41 }
 0x42e   :  { %v720_v43 = vpop.permute.xlu1 %719 }
 0x42f   :  { %v797_v44 = vmul.f32 1.442695, %v787_v42  ;;  %v740_v45 = vsub.f32 %v2369_v59, %v720_v43 }
 0x430   :  { %v714_v46 = vpop.permute.xlu0 %713 }
 0x431   :  { %2108 = vpow2.f32 %v797_v44  ;;  %v751_v47 = vmul.f32 1.442695, %v740_v45  ;;  %v737_v48 = vsub.f32 %v2358_v57, %v714_v46 }
 0x432   :  { %v768_v49 = vpop.permute.xlu1 %767 }
 0x433   :  { %2110 = vpow2.f32 %v751_v47  ;;  %v745_v50 = vmul.f32 1.442695, %v737_v48  ;;  %v788_v51 = vsub.f32 %v2369_v59, %v768_v49 }
 0x434   :  { %v762_v52 = vpop.permute.xlu0 %761 }
 0x435   :  { %2112 = vpow2.f32 %v745_v50  ;;  %v799_v53 = vmul.f32 1.442695, %v788_v51  ;;  %v785_v54 = vsub.f32 %v2358_v57, %v762_v52  ;;  %v3826_v50 = vmov 0  }
 0x436   :  { %v716_v56 = vpop.permute.xlu1 %715  ;;  %2077 = vset.pattern.permute.xlu1 %v3826_v50  ;;  %2076 = vset.pattern.permute.xlu0 %v3826_v50 }
 0x437   :  { %2114 = vpow2.f32 %v799_v53  ;;  %v793_v58 = vmul.f32 1.442695, %v785_v54  ;;  %v738_v60 = vsub.f32 %v2376_v61, %v716_v56  ;;  %v683_v56 = vsub.f32 %v2356_v55, %v2445_v9 }
 0x439   :  { %2116 = vpow2.f32 %v793_v58  ;;  %v747_v62 = vmul.f32 1.442695, %v738_v60  ;;  %v693_v58 = vmul.f32 1.442695, %v683_v56  ;;  %v684_v60 = vsub.f32 %v2369_v59, %v2451_v16 }
 0x43a   :  { %v2507_v0 = vpop.eup %2106  ;;  %v764_v2 = vpop.permute.xlu1 %763 }
 0x43b   :  { %2118 = vpow2.f32 %v747_v62  ;;  %v786_v4 = vsub.f32 %v2376_v61, %v764_v2  ;;  %821 = vrot.lane.b32.xlu0 %v2507_v0, %s2212_s16  ;;  %v681_v62 = vsub.f32 %v2358_v57, %v2455_v17  ;;  %v695_v2 = vmul.f32 1.442695, %v684_v60 }
 0x43d   :  { %v795_v6 = vmul.f32 1.442695, %v786_v4  ;;  %v689_v4 = vmul.f32 1.442695, %v681_v62  ;;  %v685_v62 = vsub.f32 %v2394_v1, %v2486_v37 }
 0x43e   :  { %v2512_v7 = vpop.eup %2108 }
 0x43f   :  { %2120 = vpow2.f32 %v795_v6  ;;  %861 = vrot.lane.b32.xlu0 %v2512_v7, %s2211_s15 }
 0x440   :  { %v2516_v8 = vpop.eup %2110 }
 0x441   :  { %823 = vrot.lane.b32.xlu1 %v2516_v8, %s2212_s16 }
 0x442   :  { %v2520_v10 = vpop.eup %2112  ;;  %v728_v11 = vpop.permute.xlu1 %727 }
 0x443   :  { %v726_v12 = vpop.permute.xlu0 %725  ;;  %v744_v13 = vsub.f32 %v2405_v3, %v728_v11  ;;  %817 = vrot.lane.b32.xlu0 %v2520_v10, %s2212_s16 }
 0x444   :  { %v743_v14 = vsub.f32 %v2387_v63, %v726_v12  ;;  %v2526_v15 = vpop.eup %2114 }
 0x445   :  { %v759_v18 = vmul.f32 1.442695, %v744_v13  ;;  %863 = vrot.lane.b32.xlu1 %v2526_v15, %s2211_s15 }
 0x446   :  { %v757_v19 = vmul.f32 1.442695, %v743_v14  ;;  %v2530_v20 = vpop.eup %2116  ;;  %v724_v21 = vpop.permute.xlu1 %723 }
 0x447   :  { %v722_v22 = vpop.permute.xlu0 %721  ;;  %2122 = vpow2.f32 %v759_v18  ;;  %v742_v24 = vsub.f32 %v2412_v5, %v724_v21  ;;  %857 = vrot.lane.b32.xlu0 %v2530_v20, %s2211_s15 }
 0x448   :  { %v741_v25 = vsub.f32 %v2394_v1, %v722_v22  ;;  %v2536_v26 = vpop.eup %2118  ;;  %2124 = vpow2.f32 %v757_v19 }
 0x449   :  { %v755_v27 = vmul.f32 1.442695, %v742_v24  ;;  %819 = vrot.lane.b32.xlu1 %v2536_v26, %s2212_s16 }
 0x44a   :  { %v753_v28 = vmul.f32 1.442695, %v741_v25  ;;  %v772_v29 = vpop.permute.xlu1 %771 }
 0x44b   :  { %v770_v30 = vpop.permute.xlu0 %769  ;;  %2126 = vpow2.f32 %v755_v27  ;;  %v790_v31 = vsub.f32 %v2412_v5, %v772_v29  ;;  %v688_v29 = vsub.f32 %v2405_v3, %v2474_v32 }
 0x44c   :  { %v789_v34 = vsub.f32 %v2394_v1, %v770_v30  ;;  %v2542_v35 = vpop.eup %2120  ;;  %2128 = vpow2.f32 %v753_v28  ;;  %v682_v28 = vsub.f32 %v2376_v61, %v2464_v23  ;;  %v687_v30 = vsub.f32 %v2387_v63, %v2476_v33 }
 0x44d   :  { %v803_v38 = vmul.f32 1.442695, %v790_v31  ;;  %859 = vrot.lane.b32.xlu1 %v2542_v35, %s2211_s15 }
 0x44e   :  { %v801_v39 = vmul.f32 1.442695, %v789_v34  ;;  %v776_v40 = vpop.permute.xlu1 %775  ;;  %v691_v34 = vmul.f32 1.442695, %v682_v28 }
 0x44f   :  { %v774_v41 = vpop.permute.xlu0 %773  ;;  %2130 = vpow2.f32 %v803_v38  ;;  %v792_v42 = vsub.f32 %v2405_v3, %v776_v40  ;;  %v703_v38 = vmul.f32 1.442695, %v688_v29  ;;  %v701_v40 = vmul.f32 1.442695, %v687_v30 }
 0x450   :  { %v791_v43 = vsub.f32 %v2387_v63, %v774_v41  ;;  %2132 = vpow2.f32 %v801_v39 }
 0x451   :  { %v807_v44 = vmul.f32 1.442695, %v792_v42 }
 0x452   :  { %v805_v45 = vmul.f32 1.442695, %v791_v43 }
 0x453   :  { %2134 = vpow2.f32 %v807_v44 }
 0x454   :  { %v2548_v46 = vpop.eup %2122  ;;  %2136 = vpow2.f32 %v805_v45 }
 0x455   :  { %v2550_v47 = vpop.eup %2124  ;;  %831 = vrot.lane.b32.xlu1 %v2548_v46, %s2212_s16  ;;  %2138 = vpow2.f32 %v693_v58  ;;  %v686_v58 = vsub.f32 %v2412_v5, %v2484_v36 }
 0x456   :  { %829 = vrot.lane.b32.xlu0 %v2550_v47, %s2212_s16  ;;  %2140 = vpow2.f32 %v695_v2 }
 0x457   :  { %2142 = vpow2.f32 %v689_v4 }
 0x458   :  { %v2556_v48 = vpop.eup %2126 }
 0x459   :  { %v2558_v49 = vpop.eup %2128  ;;  %827 = vrot.lane.b32.xlu1 %v2556_v48, %s2212_s16 }
 0x45a   :  { %825 = vrot.lane.b32.xlu0 %v2558_v49, %s2212_s16 }
 0x45c   :  { %v2566_v51 = vpop.eup %2130 }
 0x45d   :  { %v2568_v52 = vpop.eup %2132  ;;  %867 = vrot.lane.b32.xlu1 %v2566_v51, %s2211_s15 }
 0x45e   :  { %865 = vrot.lane.b32.xlu0 %v2568_v52, %s2211_s15 }
 0x460   :  { %v2574_v53 = vpop.eup %2134 }
 0x461   :  { %v2576_v54 = vpop.eup %2136  ;;  %871 = vrot.lane.b32.xlu1 %v2574_v53, %s2211_s15 }
 0x462   :  { %869 = vrot.lane.b32.xlu0 %v2576_v54, %s2211_s15  ;;  %v2139_v11 = vpop.eup %2138 }
 0x463   :  { %v2141_v9 = vpop.eup %2140 }
 0x464   :  { %v2143_v22 = vpop.eup %2142 }
 0x465   :  { %979 = vrot.lane.b32.xlu1 %v2376_v61, %s2215_s4 }
 0x466   :  { %977 = vrot.lane.b32.xlu0 %v2358_v57, %s2215_s4 }
 0x469   :  { %983 = vrot.lane.b32.xlu1 %v2369_v59, %s2215_s4 }
 0x46a   :  { %981 = vrot.lane.b32.xlu0 %v2356_v55, %s2215_s4 }
 0x46d   :  { %987 = vrot.lane.b32.xlu1 %v2412_v5, %s2215_s4 }
 0x46e   :  { %985 = vrot.lane.b32.xlu0 %v2394_v1, %s2215_s4 }
 0x471   :  { %991 = vrot.lane.b32.xlu1 %v2405_v3, %s2215_s4 }
 0x472   :  { %989 = vrot.lane.b32.xlu0 %v2387_v63, %s2215_s4 }
 0x475   :  { %1011 = vrot.lane.b32.xlu1 %v2376_v61, %s2216_s29 }
 0x476   :  { %1009 = vrot.lane.b32.xlu0 %v2358_v57, %s2216_s29 }
 0x479   :  { %1015 = vrot.lane.b32.xlu1 %v2369_v59, %s2216_s29 }
 0x47a   :  { %1013 = vrot.lane.b32.xlu0 %v2356_v55, %s2216_s29 }
 0x47d   :  { %1019 = vrot.lane.b32.xlu1 %v2412_v5, %s2216_s29 }
 0x47e   :  { %1017 = vrot.lane.b32.xlu0 %v2394_v1, %s2216_s29 }
 0x481   :  { %1023 = vrot.lane.b32.xlu1 %v2405_v3, %s2216_s29 }
 0x482   :  { %1021 = vrot.lane.b32.xlu0 %v2387_v63, %s2216_s29 }
 0x4ad   :  { %v822_v6 = vpop.permute.xlu0 %821 }
 0x4ae   :  { %v843_v12 = vadd.f32 %v2139_v11, %v822_v6  ;;  %v699_v6 = vmul.f32 1.442695, %v686_v58 }
 0x4b1   :  { %v862_v13 = vpop.permute.xlu0 %861 }
 0x4b2   :  { %v883_v14 = vadd.f32 %v862_v13, %v843_v12  ;;  %v697_v13 = vmul.f32 1.442695, %v685_v62 }
 0x4b3   :  { %v824_v18 = vpop.permute.xlu1 %823 }
 0x4b4   :  { %2144 = vrcp.f32 %v883_v14  ;;  %v844_v21 = vadd.f32 %v2141_v9, %v824_v18 }
 0x4b5   :  { %v818_v19 = vpop.permute.xlu0 %817 }
 0x4b6   :  { %v841_v24 = vadd.f32 %v2143_v22, %v818_v19 }
 0x4b7   :  { %v864_v16 = vpop.permute.xlu1 %863 }
 0x4b8   :  { %v884_v25 = vadd.f32 %v864_v16, %v844_v21 }
 0x4b9   :  { %v858_v27 = vpop.permute.xlu0 %857 }
 0x4ba   :  { %2146 = vrcp.f32 %v884_v25  ;;  %v881_v17 = vadd.f32 %v858_v27, %v841_v24 }
 0x4bb   :  { %v820_v31 = vpop.permute.xlu1 %819 }
 0x4bc   :  { %2148 = vrcp.f32 %v881_v17 }
 0x4bd   :  { %2150 = vpow2.f32 %v691_v34 }
 0x4be   :  { %2152 = vpow2.f32 %v703_v38 }
 0x4bf   :  { %v860_v42 = vpop.permute.xlu1 %859  ;;  %2154 = vpow2.f32 %v701_v40 }
 0x4c0   :  { %2156 = vpow2.f32 %v699_v6 }
 0x4c1   :  { %v2145_v39 = vpop.eup %2144  ;;  %2158 = vpow2.f32 %v697_v13 }
 0x4c2   :  { %v2618_v41 = vmul.f32 %v2145_v39, %v2139_v11 }
 0x4c7   :  { %v2147_v43 = vpop.eup %2146  ;;  %v832_v23 = vpop.permute.xlu1 %831 }
 0x4c8   :  { %v830_v44 = vpop.permute.xlu0 %829  ;;  %v2620_v45 = vmul.f32 %v2147_v43, %v2141_v9 }
 0x4c9   :  { %v2149_v32 = vpop.eup %2148 }
 0x4ca   :  { %v2622_v56 = vmul.f32 %v2149_v32, %v2143_v22  ;;  %v2628_v4 = vpop.eup %2150 }
 0x4cb   :  { %v828_v33 = vpop.permute.xlu1 %827  ;;  %v2153_v12 = vpop.eup %2152  ;;  %v842_v18 = vadd.f32 %v2628_v4, %v820_v31 }
 0x4cc   :  { %v826_v60 = vpop.permute.xlu0 %825  ;;  %v2155_v14 = vpop.eup %2154  ;;  %v848_v9 = vadd.f32 %v2153_v12, %v832_v23 }
 0x4cd   :  { %v847_v19 = vadd.f32 %v2155_v14, %v830_v44  ;;  %v882_v22 = vadd.f32 %v860_v42, %v842_v18  ;;  %v2157_v28 = vpop.eup %2156 }
 0x4ce   :  { %v2159_v29 = vpop.eup %2158  ;;  %v846_v30 = vadd.f32 %v2157_v28, %v828_v33 }
 0x4cf   :  { %v868_v2 = vpop.permute.xlu1 %867  ;;  %v845_v34 = vadd.f32 %v2159_v29, %v826_v60 }
 0x4d0   :  { %v866_v11 = vpop.permute.xlu0 %865  ;;  %v886_v40 = vadd.f32 %v868_v2, %v846_v30 }
 0x4d1   :  { %v885_v44 = vadd.f32 %v866_v11, %v845_v34 }
 0x4d3   :  { %v872_v21 = vpop.permute.xlu1 %871 }
 0x4d4   :  { %v888_v36 = vadd.f32 %v872_v21, %v848_v9  ;;  %v870_v16 = vpop.permute.xlu0 %869 }
 0x4d5   :  { %v887_v24 = vadd.f32 %v870_v16, %v847_v19 }
 0x4d6   :  { %2160 = vrcp.f32 %v888_v36 }
 0x4d7   :  { %2162 = vrcp.f32 %v887_v24  ;;  %v2631_v37 = vpop.permute.xlu1 %979 }
 0x4d8   :  { %2164 = vrcp.f32 %v882_v22  ;;  %vm1002_vm3 = vcmp.ge.f32.partialorder %v2376_v61, %v2631_v37  ;;  %v2635_v25 = vpop.permute.xlu0 %977  ;;  %v3848_v37 = vmov 0 }
 0x4d9   :  { %vm1001_vm4 = vcmp.ge.f32.partialorder %v2358_v57, %v2635_v25  ;;  %v1058_v27 = vsel %vm1002_vm3, 1, %v3826_v50  ;;  %2166 = vrcp.f32 %v886_v40 }
 0x4da   :  { %1067 = vrot.lane.b32.xlu1 %v1058_v27, %s2215_s4  ;;  %v1057_v17 = vsel %vm1001_vm4, 1, %v3826_v50  ;;  %2168 = vrcp.f32 %v885_v44 }
 0x4db   :  { %1065 = vrot.lane.b32.xlu0 %v1057_v17, %s2215_s4 }
 0x4de   :  { %919 = vrot.lane.b32.xlu1 %v2147_v43, %s2210_s13 }
 0x4df   :  { %917 = vrot.lane.b32.xlu0 %v2145_v39, %s2210_s13 }
 0x4e2   :  { %951 = vrot.lane.b32.xlu1 %v2147_v43, %s2213_s28  ;;  %v2667_v43 = vpop.permute.xlu0 %981 }
 0x4e3   :  { %v2161_v31 = vpop.eup %2160  ;;  %949 = vrot.lane.b32.xlu0 %v2145_v39, %s2213_s28  ;;  %v2662_v39 = vpop.permute.xlu1 %983  ;;  %vm1003_vm6 = vcmp.ge.f32.partialorder %v2356_v55, %v2667_v43 }
 0x4e4   :  { %v2163_v38 = vpop.eup %2162  ;;  %v2653_v42 = vmul.f32 %v2161_v31, %v2153_v12  ;;  %vm1004_vm5 = vcmp.ge.f32.partialorder %v2369_v59, %v2662_v39  ;;  %v1059_v6 = vsel %vm1003_vm6, 1, %v3826_v50 }
 0x4e5   :  { %v2165_v23 = vpop.eup %2164  ;;  %v2655_v58 = vmul.f32 %v2163_v38, %v2155_v14 }
 0x4e6   :  { %915 = vrot.lane.b32.xlu1 %v2165_v23, %s2210_s13  ;;  %v2167_v33 = vpop.eup %2166  ;;  %v2683_v2 = vpop.permute.xlu0 %985  ;;  %v2718_v9 = vmul.f32 %v2165_v23, %v2628_v4 }
 0x4e7   :  { %913 = vrot.lane.b32.xlu0 %v2149_v32, %s2210_s13  ;;  %v2669_v60 = vpop.permute.xlu1 %987  ;;  %v2169_v62 = vpop.eup %2168  ;;  %vm1005_vm9 = vcmp.ge.f32.partialorder %v2394_v1, %v2683_v2  ;;  %v2740_v21 = vmul.f32 %v2167_v33, %v2157_v28 }
 0x4e8   :  { %vm1006_vm7 = vcmp.ge.f32.partialorder %v2412_v5, %v2669_v60  ;;  %v1061_v18 = vsel %vm1005_vm9, 1, %v3826_v50  ;;  %v2734_v4 = vmul.f32 %v2169_v62, %v2159_v29  ;;  %v3861_v60 = vmov 0 }
 0x4e9   :  { %v1062_v12 = vsel %vm1006_vm7, 1, %v3826_v50 }
 0x4ea   :  { %947 = vrot.lane.b32.xlu1 %v2165_v23, %s2213_s28  ;;  %v2703_v13 = vpop.permute.xlu0 %989 }
 0x4eb   :  { %945 = vrot.lane.b32.xlu0 %v2149_v32, %s2213_s28  ;;  %v1060_v32 = vsel %vm1004_vm5, 1, %v3826_v50  ;;  %v2690_v11 = vpop.permute.xlu1 %991  ;;  %vm3803_vm10 = vcmp.ge.f32.partialorder %v2387_v63, %v2703_v13 }
 0x4ec   :  { %vm3802_vm8 = vcmp.ge.f32.partialorder %v2405_v3, %v2690_v11  ;;  %v1063_v19 = vsel %vm3803_vm10, 1, %v3826_v50 }
 0x4ed   :  { %v1064_v14 = vsel %vm3802_vm8, 1, %v3826_v50 }
 0x4ee   :  { %927 = vrot.lane.b32.xlu1 %v2161_v31, %s2210_s13  ;;  %v1010_v36 = vpop.permute.xlu0 %1009 }
 0x4ef   :  { %925 = vrot.lane.b32.xlu0 %v2163_v38, %s2210_s13  ;;  %v1012_v22 = vpop.permute.xlu1 %1011  ;;  %vm1033_vm12 = vcmp.ge.f32.partialorder %v2358_v57, %v1010_v36  ;;  %v3838_v36 = vmov 0 }
 0x4f0   :  { %vm1034_vm11 = vcmp.ge.f32.partialorder %v2376_v61, %v1012_v22  ;;  %vm2830_vm15 = vmand %vm1001_vm4, %vm1033_vm12  ;;  %v3840_v61 = vmov 0 }
 0x4f1   :  { %vm2820_vm14 = vmand %vm1002_vm3, %vm1034_vm11  ;;  %v3839_v36 = vsel %vm2830_vm15, 4294967295, %v3838_v36  ;;  %vm3808_vm3 = vmmov 1  }
 0x4f2   :  { %959 = vrot.lane.b32.xlu1 %v2161_v31, %s2213_s28  ;;  %v1014_v24 = vpop.permute.xlu0 %1013  ;;  %vm1050_vm4 = vmxor %vm2820_vm14, %vm3808_vm3 }
 0x4f3   :  { %957 = vrot.lane.b32.xlu0 %v2163_v38, %s2213_s28  ;;  %v1016_v16 = vpop.permute.xlu1 %1015  ;;  %vm1035_vm13 = vcmp.ge.f32.partialorder %v2356_v55, %v1014_v24  ;;  %v3842_v55 = vmov 0  ;;  %vm2865_vm12 = vmxor %vm2830_vm15, %vm3808_vm3  ;;  %vm3860_vm15 = vcmp.ge.f32.partialorder %v2387_v63, %v2703_v13  ;;  %v3869_v13 = vmov 0 }
 0x4f4   :  { %vm1036_vm0 = vcmp.ge.f32.partialorder %v2369_v59, %v1016_v16  ;;  %vm2841_vm1 = vmand %vm1003_vm6, %vm1035_vm13 }
 0x4f5   :  { %v3841_v61 = vsel %vm2841_vm1, 4294967295, %v3840_v61  ;;  %vm2857_vm6 = vmand %vm1004_vm5, %vm1036_vm0 }
 0x4f6   :  { %923 = vrot.lane.b32.xlu1 %v2167_v33, %s2210_s13  ;;  %v2748_v17 = vpop.permute.xlu0 %1017  ;;  %v3843_v55 = vsel %vm2857_vm6, 4294967295, %v3842_v55  ;;  %vm2877_vm5 = vmxor %vm2841_vm1, %vm3808_vm3 }
 0x4f7   :  { %921 = vrot.lane.b32.xlu0 %v2169_v62, %s2210_s13  ;;  %v2746_v27 = vpop.permute.xlu1 %1019  ;;  %vm1037_vm2 = vcmp.ge.f32.partialorder %v2394_v1, %v2748_v17  ;;  %v3852_v1 = vmov 0 }
 0x4f8   :  { %vm1038_vm13 = vcmp.ge.f32.partialorder %v2412_v5, %v2746_v27  ;;  %vm2884_vm0 = vmand %vm1005_vm9, %vm1037_vm2 }
 0x4f9   :  { %v3849_v37 = vsel %vm2884_vm0, 4294967295, %v3848_v37  ;;  %vm2899_vm10 = vmand %vm1006_vm7, %vm1038_vm13 }
 0x4fa   :  { %1071 = vrot.lane.b32.xlu1 %v1060_v32, %s2215_s4  ;;  %v2752_v30 = vpop.permute.xlu0 %1021  ;;  %v3853_v1 = vsel %vm2899_vm10, 4294967295, %v3852_v1  ;;  %vm2929_vm13 = vmxor %vm2857_vm6, %vm3808_vm3 }
 0x4fb   :  { %1069 = vrot.lane.b32.xlu0 %v1059_v6, %s2215_s4  ;;  %v2750_v29 = vpop.permute.xlu1 %1023  ;;  %vm1039_vm2 = vcmp.ge.f32.partialorder %v2387_v63, %v2752_v30 }
 0x4fe   :  { %1075 = vrot.lane.b32.xlu1 %v1062_v12, %s2215_s4 }
 0x4ff   :  { %953 = vrot.lane.b32.xlu0 %v2169_v62, %s2213_s28 }
 0x502   :  { %1079 = vrot.lane.b32.xlu1 %v1064_v14, %s2215_s4 }
 0x503   :  { %1073 = vrot.lane.b32.xlu0 %v1061_v18, %s2215_s4 }
 0x506   :  { %1208 = vrot.lane.b32.xlu1 %v2718_v9, %s2217_s30 }
 0x507   :  { %1077 = vrot.lane.b32.xlu0 %v1063_v19, %s2215_s4 }
 0x50a   :  { %1212 = vrot.lane.b32.xlu1 %v2620_v45, %s2217_s30 }
 0x50b   :  { %1206 = vrot.lane.b32.xlu0 %v2622_v56, %s2217_s30 }
 0x50e   :  { %955 = vrot.lane.b32.xlu1 %v2167_v33, %s2213_s28 }
 0x50f   :  { %1210 = vrot.lane.b32.xlu0 %v2618_v41, %s2217_s30 }
 0x512   :  { %1220 = vrot.lane.b32.xlu1 %v2653_v42, %s2217_s30 }
 0x513   :  { %1214 = vrot.lane.b32.xlu0 %v2734_v4, %s2217_s30 }
 0x516   :  { %1216 = vrot.lane.b32.xlu1 %v2740_v21, %s2217_s30 }
 0x517   :  { %1218 = vrot.lane.b32.xlu0 %v2655_v58, %s2217_s30 }
 0x54c   :  { %v2754_v28 = vpop.permute.xlu1 %1067 }
 0x54d   :  { %v2756_v31 = vpop.permute.xlu0 %1065  ;;  %vm1082_vm11 = vcmp.ne.s32.totalorder %v2754_v28, 0 }
 0x54e   :  { %vm2890_vm8 = vmand %vm1050_vm4, %vm1082_vm11  ;;  %vm1081_vm7 = vcmp.ne.s32.totalorder %v2756_v31, 0 }
 0x54f   :  { %vm2915_vm4 = vmxor %vm2884_vm0, %vm3808_vm3 }
 0x550   :  { %v920_v34 = vpop.permute.xlu1 %919  ;;  %vm2944_vm11 = vmand %vm3860_vm15, %vm1039_vm2 }
 0x551   :  { %v2759_v38 = vmul.f32 %v2516_v8, %v920_v34  ;;  %v918_v40 = vpop.permute.xlu0 %917  ;;  %v3862_v60 = vsel %vm2944_vm11, 4294967295, %v3861_v60  ;;  %vm2950_vm6 = vmand %vm2865_vm12, %vm1081_vm7 }
 0x552   :  { %v2762_v23 = vmul.f32 %v2507_v0, %v918_v40  ;;  %vm3865_vm15 = vmor %vm2820_vm14, %vm2890_vm8 }
 0x553   :  { %1124 = vrot.lane.b32.xlu1 %v2759_v38, %s2212_s16  ;;  %v1399_v63 = vsel %vm3865_vm15, 1, %v3826_v50 }
 0x554   :  { %1122 = vrot.lane.b32.xlu0 %v2762_v23, %s2212_s16  ;;  %v952_v44 = vpop.permute.xlu1 %951 }
 0x555   :  { %v2768_v33 = vpop.permute.xlu0 %949 }
 0x556   :  { %v2910_v2 = vmul.f32 %v2512_v7, %v2768_v33 }
 0x557   :  { %1324 = vrot.lane.b32.xlu1 %v2759_v38, %s2218_s10 }
 0x558   :  { %1322 = vrot.lane.b32.xlu0 %v2762_v23, %s2218_s10  ;;  %v916_v8 = vpop.permute.xlu1 %915 }
 0x559   :  { %v2775_v0 = vmul.f32 %v2536_v26, %v916_v8  ;;  %v914_v62 = vpop.permute.xlu0 %913 }
 0x55a   :  { %v2778_v32 = vmul.f32 %v2520_v10, %v914_v62 }
 0x55b   :  { %1120 = vrot.lane.b32.xlu1 %v2775_v0, %s2212_s16 }
 0x55c   :  { %1118 = vrot.lane.b32.xlu0 %v2778_v32, %s2212_s16  ;;  %v948_v6 = vpop.permute.xlu1 %947 }
 0x55d   :  { %v946_v12 = vpop.permute.xlu0 %945 }
 0x55e   :  { %v2836_v24 = vmul.f32 %v2530_v20, %v946_v12  ;;  %v2870_v20 = vmul.f32 %v2526_v15, %v952_v44  ;;  %v3850_v15 = vmov 0  ;;  %v3874_v44 = vmov 0 }
 0x55f   :  { %1320 = vrot.lane.b32.xlu1 %v2775_v0, %s2218_s10  ;;  %v3851_v15 = vsel %vm2890_vm8, 4294967295, %v3850_v15  ;;  %vm1040_vm8 = vcmp.ge.f32.partialorder %v2405_v3, %v2750_v29  ;;  %v1105_v29 = vlaneseq }
 0x560   :  { %1318 = vrot.lane.b32.xlu0 %v2778_v32, %s2218_s10  ;;  %v928_v26 = vpop.permute.xlu1 %927 }
 0x561   :  { %v2789_v14 = vmul.f32 %v2548_v46, %v928_v26  ;;  %v926_v10 = vpop.permute.xlu0 %925 }
 0x562   :  { %v2792_v18 = vmul.f32 %v2550_v47, %v926_v10  ;;  %v3454_v10 = vand.u32 127, %v1105_v29 }
 0x563   :  { %1132 = vrot.lane.b32.xlu1 %v2789_v14, %s2212_s16 }
 0x564   :  { %1130 = vrot.lane.b32.xlu0 %v2792_v18, %s2212_s16  ;;  %v960_v19 = vpop.permute.xlu1 %959 }
 0x565   :  { %v2798_v34 = vpop.permute.xlu0 %957  ;;  %v2904_v39 = vmul.f32 %v2574_v53, %v960_v19  ;;  %v1448_v19 = vsel %vm2950_vm6, 1, %v3826_v50 }
 0x566   :  { %v2987_v28 = vmul.f32 %v2576_v54, %v2798_v34 }
 0x567   :  { %1332 = vrot.lane.b32.xlu1 %v2789_v14, %s2218_s10 }
 0x568   :  { %1330 = vrot.lane.b32.xlu0 %v2792_v18, %s2218_s10  ;;  %v924_v46 = vpop.permute.xlu1 %923 }
 0x569   :  { %v2805_v40 = vmul.f32 %v2556_v48, %v924_v46  ;;  %v922_v47 = vpop.permute.xlu0 %921  ;;  %v3836_v48 = vmov 0 }
 0x56a   :  { %v2809_v8 = vmul.f32 %v2558_v49, %v922_v47  ;;  %v3837_v48 = vsel %vm2820_vm14, 4294967295, %v3836_v48  ;;  %v2825_v49 = vmul.f32 %v2542_v35, %v948_v6  ;;  %vm3878_vm14 = vcmp.ge.f32.partialorder %v2405_v3, %v2690_v11 }
 0x56b   :  { %1128 = vrot.lane.b32.xlu1 %v2805_v40, %s2212_s16 }
 0x56c   :  { %1126 = vrot.lane.b32.xlu0 %v2809_v8, %s2212_s16  ;;  %v1072_v25 = vpop.permute.xlu1 %1071 }
 0x56d   :  { %v1070_v22 = vpop.permute.xlu0 %1069  ;;  %vm1084_vm12 = vcmp.ne.s32.totalorder %v1072_v25, 0 }
 0x56e   :  { %vm1083_vm9 = vcmp.ne.s32.totalorder %v1070_v22, 0 }
 0x56f   :  { %1368 = vrot.lane.b32.xlu1 %v2825_v49, %s2219_s11  ;;  %vm2935_vm0 = vmand %vm2877_vm5, %vm1083_vm9  ;;  %vm3866_vm5 = vmmov 1  }
 0x570   :  { %1366 = vrot.lane.b32.xlu0 %v2836_v24, %s2219_s11  ;;  %v1076_v27 = vpop.permute.xlu1 %1075  ;;  %vm2970_vm9 = vmxor %vm2899_vm10, %vm3866_vm5  ;;  %vm3873_vm10 = vnez %v3849_v37  ;;  %v1450_v47 = vsel %vm2935_vm0, 1, %v3826_v50 }
 0x571   :  { %v954_v35 = vpop.permute.xlu0 %953  ;;  %vm1055_vm7 = vmxor %vm2944_vm11, %vm3866_vm5 }
 0x572   :  { %v2955_v17 = vmul.f32 %v2568_v52, %v954_v35  ;;  %v3867_v52 = vmov 0 }
 0x573   :  { %1372 = vrot.lane.b32.xlu1 %v2870_v20, %s2219_s11  ;;  %v3868_v52 = vsel %vm2970_vm9, 4294967295, %v3867_v52 }
 0x574   :  { %1326 = vrot.lane.b32.xlu0 %v2809_v8, %s2218_s10  ;;  %v1080_v54 = vpop.permute.xlu1 %1079 }
 0x575   :  { %v1074_v43 = vpop.permute.xlu0 %1073 }
 0x576   :  { %vm1085_vm3 = vcmp.ne.s32.totalorder %v1074_v43, 0 }
 0x577   :  { %1380 = vrot.lane.b32.xlu1 %v2904_v39, %s2219_s11  ;;  %vm2976_vm2 = vmand %vm2915_vm4, %vm1085_vm3  ;;  %vm3872_vm4 = vnez %v3839_v36 }
 0x578   :  { %1370 = vrot.lane.b32.xlu0 %v2910_v2, %s2219_s11  ;;  %v3870_v13 = vsel %vm2976_vm2, 4294967295, %v3869_v13  ;;  %vm3871_vm3 = vmor %vm2841_vm1, %vm2935_vm0  ;;  %v3050_v11 = vpop.permute.xlu1 %1208 }
 0x579   :  { %v1078_v30 = vpop.permute.xlu0 %1077  ;;  %v1400_v31 = vsel %vm3871_vm3, 1, %v3826_v50  ;;  %vm3821_vm5 = vmor %vm3873_vm10, %vm2976_vm2  ;;  %vm1088_vm10 = vcmp.ne.s32.totalorder %v1080_v54, 0 }
 0x57a   :  { %vm1087_vm15 = vcmp.ne.s32.totalorder %v1078_v30, 0  ;;  %vm3013_vm3 = vmand %vm2929_vm13, %vm1084_vm12  ;;  %v1402_v62 = vsel %vm3821_vm5, 1, %v3826_v50 }
 0x57b   :  { %1410 = vperm.xlu1 %2077, %v1399_v63   ;;  %vm3005_vm9 = vmand %vm1055_vm7, %vm1087_vm15  ;;  %vm1086_vm7 = vcmp.ne.s32.totalorder %v1076_v27, 0  ;;  %vm3883_vm15 = vnez %v3868_v52  ;;  %v1451_v25 = vsel %vm3013_vm3, 1, %v3826_v50 }
 0x57c   :  { %1374 = vrot.lane.b32.xlu0 %v2955_v17, %s2219_s11  ;;  %v3875_v44 = vsel %vm3005_vm9, 4294967295, %v3874_v44  ;;  %vm3020_vm1 = vmand %vm3878_vm14, %vm1040_vm8  ;;  %vm3882_vm14 = vnez %v3843_v55  ;;  %v3084_v46 = vpop.permute.xlu1 %1212 }
 0x57d   :  { %vm3881_vm13 = vmor %vm3872_vm4, %vm2950_vm6  ;;  %v3112_v43 = vpop.permute.xlu0 %1206 }
 0x57e   :  { %v1398_v6 = vsel %vm3881_vm13, 1, %v3826_v50  ;;  %vm3828_vm8 = vmor %vm2944_vm11, %vm3005_vm9  ;;  %vm3886_vm13 = vmmov 1  }
 0x57f   :  { %1413 = vperm.xlu1 %2077, %v1400_v31   ;;  %vm3046_vm5 = vmand %vm3883_vm15, %vm1086_vm7  ;;  %v1404_v12 = vsel %vm3828_vm8, 1, %v3826_v50  ;;  %vm3888_vm15 = vnez %v3853_v1  ;;  %vm3910_vm8 = vnez %v3841_v61 }
 0x580   :  { %1378 = vrot.lane.b32.xlu0 %v2987_v28, %s2219_s11  ;;  %vm1056_vm12 = vmxor %vm3020_vm1, %vm3886_vm13  ;;  %v956_v57 = vpop.permute.xlu1 %955  ;;  %vm3908_vm13 = vnez %v3839_v36 }
 0x581   :  { %vm3887_vm7 = vmor %vm3882_vm14, %vm3013_vm3  ;;  %v3105_v59 = vmul.f32 %v2566_v51, %v956_v57  ;;  %v3114_v5 = vpop.permute.xlu0 %1210 }
 0x582   :  { %v1401_v26 = vsel %vm3887_vm7, 1, %v3826_v50  ;;  %vm3830_vm4 = vmor %vm3888_vm15, %vm3046_vm5  ;;  %vm3909_vm7 = vnez %v3837_v48 }
 0x583   :  { %1419 = vperm.xlu1 %2077, %v1402_v62   ;;  %vm3071_vm11 = vmand %vm1056_vm12, %vm1088_vm10  ;;  %v1403_v34 = vsel %vm3830_vm4, 1, %v3826_v50  ;;  %vm3891_vm12 = vnez %v3851_v15 }
 0x584   :  { %1407 = vperm.xlu0 %2076, %v1398_v6   ;;  %vm3829_vm10 = vmor %vm3020_vm1, %vm3071_vm11  ;;  %v1449_v35 = vsel %vm3891_vm12, 1, %v3826_v50  ;;  %v3116_v7 = vpop.permute.xlu1 %1220 }
 0x585   :  { %v1405_v22 = vsel %vm3829_vm10, 1, %v3826_v50  ;;  %v3118_v27 = vpop.permute.xlu0 %1214  ;;  %vm3911_vm10 = vnez %v3849_v37  ;;  %vm3912_vm4 = vmor %vm3909_vm7, %vm3891_vm12 }
 0x587   :  { %1425 = vperm.xlu1 %2077, %v1404_v12  }
 0x588   :  { %1416 = vperm.xlu0 %2076, %v1401_v26   ;;  %v3120_v30 = vpop.permute.xlu1 %1216 }
 0x589   :  { %v3122_v51 = vpop.permute.xlu0 %1218 }
 0x58b   :  { %1457 = vperm.xlu1 %2077, %v1448_v19  }
 0x58c   :  { %1422 = vperm.xlu0 %2076, %v1403_v34  }
 0x58f   :  { %1463 = vperm.xlu1 %2077, %v1450_v47  }
 0x590   :  { %1428 = vperm.xlu0 %2076, %v1405_v22  }
 0x593   :  { %1328 = vrot.lane.b32.xlu1 %v2805_v40, %s2218_s10 }
 0x594   :  { %1460 = vperm.xlu0 %2076, %v1449_v35  }
 0x597   :  { %1376 = vrot.lane.b32.xlu1 %v3105_v59, %s2219_s11 }
 0x598   :  { %1466 = vperm.xlu0 %2076, %v1451_v25  }
 0x5c5   :  { %v1125_v63 = vpop.permute.xlu1 %1124 }
 0x5c6   :  { %v1145_v52 = vadd.f32 %v1125_v63, %v2620_v45  ;;  %v1123_v31 = vpop.permute.xlu0 %1122 }
 0x5c7   :  { %v1144_v54 = vadd.f32 %v1123_v31, %v2618_v41 }
 0x5c8   :  { %2170 = vrcp.f32 %v1145_v52 }
 0x5c9   :  { %2172 = vrcp.f32 %v1144_v54  ;;  %v3126_v62 = vpop.permute.xlu1 %1324 }
 0x5ca   :  { %v3128_v6 = vpop.permute.xlu0 %1322 }
 0x5cd   :  { %v1121_v12 = vpop.permute.xlu1 %1120 }
 0x5ce   :  { %v1143_v26 = vadd.f32 %v1121_v12, %v2718_v9  ;;  %v1119_v19 = vpop.permute.xlu0 %1118 }
 0x5cf   :  { %v1142_v34 = vadd.f32 %v1119_v19, %v2622_v56 }
 0x5d0   :  { %2174 = vrcp.f32 %v1143_v26 }
 0x5d1   :  { %2176 = vrcp.f32 %v1142_v34  ;;  %v3132_v47 = vpop.permute.xlu1 %1320 }
 0x5d2   :  { %v3134_v22 = vpop.permute.xlu0 %1318 }
 0x5d3   :  { %3892 = vst [vmem:[#allocation5_spill] sm:$0xff] %v3134_v22 }
 0x5d5   :  { %v2171_v57 = vpop.eup %2170  ;;  %v1133_v35 = vpop.permute.xlu1 %1132 }
 0x5d6   :  { %v2173_v25 = vpop.eup %2172  ;;  %v1149_v63 = vadd.f32 %v1133_v35, %v2653_v42  ;;  %v1131_v52 = vpop.permute.xlu0 %1130  ;;  %1260 = vrot.lane.b32.xlu1 %v2171_v57, %s2210_s13  ;;  %v1161_v54 = vmul.f32 %v2171_v57, %v2620_v45 }
 0x5d7   :  { %v1148_v31 = vadd.f32 %v1131_v52, %v2655_v58  ;;  %1258 = vrot.lane.b32.xlu0 %v2173_v25, %s2210_s13  ;;  %v1160_v26 = vmul.f32 %v2173_v25, %v2618_v41 }
 0x5d8   :  { %2178 = vrcp.f32 %v1149_v63 }
 0x5d9   :  { %2180 = vrcp.f32 %v1148_v31  ;;  %v3141_v12 = vpop.permute.xlu1 %1332 }
 0x5da   :  { %v3144_v19 = vpop.permute.xlu0 %1330  ;;  %1180 = vrot.lane.b32.xlu1 %v1161_v54, %s2217_s30  ;;  %v3921_v55 = vld [vmem:[#allocation5_spill] sm:$0xff] }
 0x5db   :  { %1178 = vrot.lane.b32.xlu0 %v1160_v26, %s2217_s30 }
 0x5dd   :  { %v2175_v34 = vpop.eup %2174  ;;  %v1129_v35 = vpop.permute.xlu1 %1128 }
 0x5de   :  { %v2177_v50 = vpop.eup %2176  ;;  %v1147_v52 = vadd.f32 %v1129_v35, %v2740_v21  ;;  %v1127_v22 = vpop.permute.xlu0 %1126  ;;  %1256 = vrot.lane.b32.xlu1 %v2175_v34, %s2210_s13  ;;  %v1159_v25 = vmul.f32 %v2175_v34, %v2718_v9  ;;  %v3893_v35 = vmov 0  }
 0x5df   :  { %v1146_v57 = vadd.f32 %v1127_v22, %v2734_v4  ;;  %1254 = vrot.lane.b32.xlu0 %v2177_v50, %s2210_s13  ;;  %v1158_v63 = vmul.f32 %v2177_v50, %v2622_v56 }
 0x5e0   :  { %2182 = vrcp.f32 %v1147_v52  ;;  %v1452_v52 = vsel %vm2976_vm2, 1, %v3893_v35 }
 0x5e1   :  { %2184 = vrcp.f32 %v1146_v57 }
 0x5e2   :  { %1176 = vrot.lane.b32.xlu1 %v1159_v25, %s2217_s30  ;;  %v1454_v25 = vsel %vm3005_vm9, 1, %v3893_v35 }
 0x5e3   :  { %1174 = vrot.lane.b32.xlu0 %v1158_v63, %s2217_s30  ;;  %v1453_v63 = vsel %vm3046_vm5, 1, %v3893_v35 }
 0x5e5   :  { %v2179_v31 = vpop.eup %2178 }
 0x5e6   :  { %v2181_v54 = vpop.eup %2180  ;;  %1268 = vrot.lane.b32.xlu1 %v2179_v31, %s2210_s13  ;;  %v1165_v22 = vmul.f32 %v2179_v31, %v2653_v42  ;;  %v1455_v31 = vsel %vm3071_vm11, 1, %v3893_v35 }
 0x5e7   :  { %1266 = vrot.lane.b32.xlu0 %v2181_v54, %s2210_s13  ;;  %v1164_v26 = vmul.f32 %v2181_v54, %v2655_v58 }
 0x5ea   :  { %1188 = vrot.lane.b32.xlu1 %v1165_v22, %s2217_s30 }
 0x5eb   :  { %1186 = vrot.lane.b32.xlu0 %v1164_v26, %s2217_s30 }
 0x5ed   :  { %v2183_v34 = vpop.eup %2182 }
 0x5ee   :  { %v2185_v50 = vpop.eup %2184  ;;  %1264 = vrot.lane.b32.xlu1 %v2183_v34, %s2210_s13 }
 0x5ef   :  { %1262 = vrot.lane.b32.xlu0 %v2185_v50, %s2210_s13  ;;  %v1162_v57 = vmul.f32 %v2185_v50, %v2734_v4 }
 0x5f2   :  { %1469 = vperm.xlu1 %2077, %v1452_v52  }
 0x5f3   :  { %1182 = vrot.lane.b32.xlu0 %v1162_v57, %s2217_s30 }
 0x5f6   :  { %1475 = vperm.xlu1 %2077, %v1454_v25  }
 0x5f7   :  { %1472 = vperm.xlu0 %2076, %v1453_v63  }
 0x5fa   :  { %1506 = vrot.lane.b32.xlu1 %v2622_v56, %s2212_s16  ;;  %v3192_v56 = vpop.permute.xlu1 %1368 }
 0x5fb   :  { %1478 = vperm.xlu0 %2076, %v1455_v31  }
 0x5fe   :  { %1510 = vrot.lane.b32.xlu1 %v2618_v41, %s2212_s16  ;;  %v3196_v41 = vpop.permute.xlu0 %1366 }
 0x5ff   :  { %1508 = vrot.lane.b32.xlu0 %v2718_v9, %s2212_s16 }
 0x602   :  { %1514 = vrot.lane.b32.xlu1 %v2734_v4, %s2212_s16  ;;  %v1163_v4 = vmul.f32 %v2183_v34, %v2740_v21 }
 0x603   :  { %1512 = vrot.lane.b32.xlu0 %v2620_v45, %s2212_s16  ;;  %v3204_v45 = vpop.permute.xlu1 %1372 }
 0x606   :  { %1518 = vrot.lane.b32.xlu1 %v2655_v58, %s2212_s16  ;;  %v3206_v58 = vpop.permute.xlu0 %1326 }
 0x607   :  { %1516 = vrot.lane.b32.xlu0 %v2740_v21, %s2212_s16  ;;  %v3212_v9 = vpop.permute.xlu1 %1380 }
 0x608   :  { %3894 = vst [vmem:[#allocation6_spill] sm:$0xff] %v3212_v9 }
 0x60a   :  { %1538 = vrot.lane.b32.xlu1 %v2778_v32, %s2211_s15 }
 0x60b   :  { %1520 = vrot.lane.b32.xlu0 %v2653_v42, %s2212_s16  ;;  %v3216_v42 = vpop.permute.xlu0 %1370  ;;  %v3221_v54 = vpop.permute.xlu1 %1410 }
 0x60c   :  { %3895 = vst [vmem:[#allocation7_spill] sm:$0xff] %v3221_v54 }
 0x60e   :  { %1542 = vrot.lane.b32.xlu1 %v2762_v23, %s2211_s15 }
 0x60f   :  { %1540 = vrot.lane.b32.xlu0 %v2775_v0, %s2211_s15  ;;  %v3226_v22 = vpop.permute.xlu0 %1374  ;;  %v3228_v26 = vpop.permute.xlu1 %1413 }
 0x610   :  { %3896 = vst [vmem:[#allocation8_spill] sm:$0xff] %v3228_v26 }
 0x612   :  { %1546 = vrot.lane.b32.xlu1 %v2809_v8, %s2211_s15 }
 0x613   :  { %1544 = vrot.lane.b32.xlu0 %v2759_v38, %s2211_s15  ;;  %v3230_v50 = vpop.permute.xlu0 %1378  ;;  %v3232_v35 = vpop.permute.xlu1 %1419 }
 0x614   :  { %3897 = vst [vmem:[#allocation9_spill] sm:$0xff] %v3230_v50  ;;  %3898 = vst [vmem:[#allocation10_spill] sm:$0xff] %v3232_v35 }
 0x616   :  { %1550 = vrot.lane.b32.xlu1 %v2792_v18, %s2211_s15 }
 0x617   :  { %1548 = vrot.lane.b32.xlu0 %v2805_v40, %s2211_s15  ;;  %v3234_v52 = vpop.permute.xlu0 %1407  ;;  %v3236_v57 = vpop.permute.xlu1 %1425 }
 0x618   :  { %3899 = vst [vmem:[#allocation11_spill] sm:$0xff] %v3234_v52  ;;  %3900 = vst [vmem:[#allocation12_spill] sm:$0xff] %v3236_v57 }
 0x61a   :  { %1184 = vrot.lane.b32.xlu1 %v1163_v4, %s2217_s30 }
 0x61b   :  { %1552 = vrot.lane.b32.xlu0 %v2789_v14, %s2211_s15  ;;  %v3238_v21 = vpop.permute.xlu0 %1416  ;;  %v3240_v34 = vpop.permute.xlu1 %1457 }
 0x61c   :  { %3901 = vst [vmem:[#allocation13_spill] sm:$0xff] %v3238_v21  ;;  %3902 = vst [vmem:[#allocation14_spill] sm:$0xff] %v3240_v34 }
 0x61f   :  { %v3242_v25 = vpop.permute.xlu0 %1422  ;;  %v3244_v63 = vpop.permute.xlu1 %1463 }
 0x620   :  { %3903 = vst [vmem:[#allocation15_spill] sm:$0xff] %v3242_v25  ;;  %3904 = vst [vmem:[#allocation16_spill] sm:$0xff] %v3244_v63 }
 0x623   :  { %v3246_v31 = vpop.permute.xlu0 %1428  ;;  %v3248_v4 = vpop.permute.xlu1 %1328 }
 0x624   :  { %3905 = vst [vmem:[#allocation17_spill] sm:$0xff] %v3246_v31 }
 0x627   :  { %v3250_v54 = vpop.permute.xlu0 %1460  ;;  %v3252_v26 = vpop.permute.xlu1 %1376 }
 0x628   :  { %3906 = vst [vmem:[#allocation18_spill] sm:$0xff] %v3250_v54 }
 0x62b   :  { %v3254_v35 = vpop.permute.xlu0 %1466 }
 0x62c   :  { %3907 = vst [vmem:[#allocation19_spill] sm:$0xff] %v3254_v35 }
 0x648   :  { %v1261_v52 = vpop.permute.xlu1 %1260 }
 0x649   :  { %v1281_v57 = vmul.f32 %v1261_v52, %v2759_v38  ;;  %v1259_v21 = vpop.permute.xlu0 %1258 }
 0x64a   :  { %v1280_v34 = vmul.f32 %v1259_v21, %v2762_v23 }
 0x64b   :  { %1300 = vrot.lane.b32.xlu1 %v1281_v57, %s2218_s10 }
 0x64c   :  { %1298 = vrot.lane.b32.xlu0 %v1280_v34, %s2218_s10  ;;  %v1181_v25 = vpop.permute.xlu1 %1180 }
 0x64d   :  { %v1179_v31 = vpop.permute.xlu0 %1178 }
 0x650   :  { %v1257_v63 = vpop.permute.xlu1 %1256 }
 0x651   :  { %v1279_v50 = vmul.f32 %v1257_v63, %v2775_v0  ;;  %v1255_v54 = vpop.permute.xlu0 %1254 }
 0x652   :  { %v1278_v9 = vmul.f32 %v1255_v54, %v2778_v32 }
 0x653   :  { %1296 = vrot.lane.b32.xlu1 %v1279_v50, %s2218_s10  ;;  %v1391_v50 = vsel %vm3912_vm4, 1e-10, %v3192_v56  ;;  %vm3915_vm4 = vmor %vm3908_vm13, %vm2950_vm6 }
 0x654   :  { %1294 = vrot.lane.b32.xlu0 %v1278_v9, %s2218_s10  ;;  %v1177_v38 = vpop.permute.xlu1 %1176 }
 0x655   :  { %v1175_v52 = vpop.permute.xlu0 %1174 }
 0x658   :  { %v1269_v35 = vpop.permute.xlu1 %1268 }
 0x659   :  { %v1285_v23 = vmul.f32 %v1269_v35, %v2789_v14  ;;  %v1267_v57 = vpop.permute.xlu0 %1266 }
 0x65a   :  { %v1284_v21 = vmul.f32 %v1267_v57, %v2792_v18 }
 0x65b   :  { %1308 = vrot.lane.b32.xlu1 %v1285_v23, %s2218_s10 }
 0x65c   :  { %1306 = vrot.lane.b32.xlu0 %v1284_v21, %s2218_s10  ;;  %v1189_v0 = vpop.permute.xlu1 %1188 }
 0x65d   :  { %v1187_v34 = vpop.permute.xlu0 %1186 }
 0x65e   :  { %v1236_v35 = vsel %vm3005_vm9, %v1187_v34, %v3122_v51  ;;  %v1390_v51 = vsel %vm3915_vm4, 1e-10, %v3196_v41  ;;  %vm3919_vm4 = vnez %v3870_v13 }
 0x660   :  { %v1265_v63 = vpop.permute.xlu1 %1264 }
 0x661   :  { %v1283_v32 = vmul.f32 %v1265_v63, %v2805_v40  ;;  %v1263_v54 = vpop.permute.xlu0 %1262  ;;  %v1230_v40 = vsel %vm2950_vm6, %v1175_v52, %v3112_v43  ;;  %v1237_v52 = vsel %vm3071_vm11, %v1189_v0, %v3116_v7 }
 0x662   :  { %v1282_v9 = vmul.f32 %v1263_v54, %v2809_v8  ;;  %v1231_v8 = vsel %vm3891_vm12, %v1177_v38, %v3050_v11 }
 0x663   :  { %1304 = vrot.lane.b32.xlu1 %v1283_v32, %s2218_s10 }
 0x664   :  { %1302 = vrot.lane.b32.xlu0 %v1282_v9, %s2218_s10 }
 0x667   :  { %1570 = vrot.lane.b32.xlu1 %v2836_v24, %s2221_s12  ;;  %v1238_v24 = vsel %vm3908_vm13, 1.0, %v1230_v40 }
 0x668   :  { %1572 = vrot.lane.b32.xlu0 %v2825_v49, %s2221_s12 }
 0x66b   :  { %1574 = vrot.lane.b32.xlu1 %v2910_v2, %s2221_s12  ;;  %v1239_v2 = vsel %vm3909_vm7, 1.0, %v1231_v8 }
 0x66c   :  { %1576 = vrot.lane.b32.xlu0 %v2870_v20, %s2221_s12  ;;  %v1232_v20 = vsel %vm2935_vm0, %v1179_v31, %v3114_v5 }
 0x66d   :  { %v3276_v14 = vpop.permute.xlu1 %1469  ;;  %v1240_v11 = vsel %vm3910_vm8, 1.0, %v1232_v20 }
 0x66f   :  { %1578 = vrot.lane.b32.xlu1 %v2955_v17, %s2221_s12  ;;  %v1233_v17 = vsel %vm3013_vm3, %v1181_v25, %v3084_v46 }
 0x670   :  { %1580 = vrot.lane.b32.xlu0 %v3105_v59, %s2221_s12  ;;  %v1241_v59 = vsel %vm3882_vm14, 1.0, %v1233_v17 }
 0x671   :  { %v3280_v18 = vpop.permute.xlu1 %1475 }
 0x673   :  { %1582 = vrot.lane.b32.xlu1 %v2987_v28, %s2221_s12  ;;  %v1183_v28 = vpop.permute.xlu0 %1182 }
 0x674   :  { %1584 = vrot.lane.b32.xlu0 %v2904_v39, %s2221_s12  ;;  %v1234_v43 = vsel %vm2976_vm2, %v1183_v28, %v3118_v27  ;;  %vm3913_vm2 = vnez %v3862_v60 }
 0x675   :  { %v3290_v49 = vpop.permute.xlu1 %1506  ;;  %v1242_v46 = vsel %vm3911_vm10, 1.0, %v1234_v43  ;;  %v1244_v25 = vsel %vm3913_vm2, 1.0, %v1236_v35  ;;  %vm3914_vm10 = vmor %vm3882_vm14, %vm3013_vm3 }
 0x676   :  { %v1393_v31 = vsel %vm3914_vm10, 1e-10, %v3204_v45  ;;  %vm3916_vm2 = vmor %vm3888_vm15, %vm3046_vm5 }
 0x677   :  { %1606 = vperm.xlu1 %2077, %v1238_v24   ;;  %v3334_v56 = vpop.permute.xlu0 %1472  ;;  %v1395_v45 = vsel %vm3916_vm2, 1e-10, %v3252_v26  ;;  %vm3917_vm10 = vmor %vm3910_vm8, %vm2935_vm0  ;;  %v1245_v26 = vsel %vm3020_vm1, 1.0, %v1237_v52  ;;  %vm3918_vm2 = vnez %v3849_v37 }
 0x678   :  { %1611 = vperm.xlu0 %2076, %v1239_v2   ;;  %v1392_v41 = vsel %vm3917_vm10, 1e-10, %v3216_v42  ;;  %vm3920_vm9 = vmor %vm3918_vm2, %vm3919_vm4 }
 0x679   :  { %v3302_v39 = vpop.permute.xlu1 %1510  ;;  %v1394_v7 = vsel %vm3920_vm9, 1e-10, %v3226_v22  ;;  %vm3925_vm9 = vmor %vm3020_vm1, %vm3071_vm11 }
 0x67b   :  { %1616 = vperm.xlu1 %2077, %v1240_v11   ;;  %v3361_v57 = vpop.permute.xlu0 %1478 }
 0x67c   :  { %1621 = vperm.xlu0 %2076, %v1241_v59  }
 0x67d   :  { %v3311_v5 = vpop.permute.xlu1 %1514 }
 0x67f   :  { %1626 = vperm.xlu1 %2077, %v1242_v46   ;;  %v3373_v0 = vpop.permute.xlu0 %1508 }
 0x680   :  { %1707 = vperm.xlu0 %2076, %v1391_v50  }
 0x681   :  { %v3324_v27 = vpop.permute.xlu1 %1518 }
 0x683   :  { %1636 = vperm.xlu1 %2077, %v1244_v25   ;;  %v3377_v63 = vpop.permute.xlu0 %1512 }
 0x684   :  { %1717 = vperm.xlu0 %2076, %v1393_v31  }
 0x685   :  { %v3336_v38 = vpop.permute.xlu1 %1538 }
 0x687   :  { %1702 = vperm.xlu1 %2077, %v1390_v51   ;;  %v3384_v9 = vpop.permute.xlu0 %1516  ;;  %v3924_v51 = vld [vmem:[#allocation6_spill] sm:$0xff] }
 0x688   :  { %1727 = vperm.xlu0 %2076, %v1395_v45   ;;  %v1397_v3 = vsel %vm3925_vm9, 1e-10, %v3924_v51 }
 0x689   :  { %v3353_v23 = vpop.permute.xlu1 %1542 }
 0x68b   :  { %1712 = vperm.xlu1 %2077, %v1392_v41   ;;  %v3386_v40 = vpop.permute.xlu0 %1520 }
 0x68c   :  { %1641 = vperm.xlu0 %2076, %v1245_v26  }
 0x68d   :  { %v3365_v21 = vpop.permute.xlu1 %1546 }
 0x68f   :  { %1722 = vperm.xlu1 %2077, %v1394_v7   ;;  %v3388_v22 = vpop.permute.xlu0 %1540  ;;  %v3930_v7 = vld [vmem:[#allocation16_spill] sm:$0xff] }
 0x691   :  { %v3375_v42 = vpop.permute.xlu1 %1550 }
 0x693   :  { %v3390_v8 = vpop.permute.xlu0 %1544 }
 0x695   :  { %v1185_v34 = vpop.permute.xlu1 %1184 }
 0x696   :  { %v1235_v32 = vsel %vm3046_vm5, %v1185_v34, %v3120_v30 }
 0x697   :  { %v1243_v54 = vsel %vm3888_vm15, 1.0, %v1235_v32  ;;  %v3392_v24 = vpop.permute.xlu0 %1548  ;;  %v3931_v32 = vld [vmem:[#allocation8_spill] sm:$0xff] }
 0x698   :  { %1631 = vperm.xlu0 %2076, %v1243_v54  }
 0x69b   :  { %v3394_v20 = vpop.permute.xlu0 %1552 }
 0x6bd   :  { %v1301_v2 = vpop.permute.xlu1 %1300 }
 0x6be   :  { %v1345_v30 = vsel %vm3013_vm3, %v1301_v2, %v3126_v62  ;;  %v1299_v17 = vpop.permute.xlu0 %1298 }
 0x6bf   :  { %v1353_v28 = vsel %vm3882_vm14, 1e-10, %v1345_v30  ;;  %v1344_v11 = vsel %vm2935_vm0, %v1299_v17, %v3128_v6  ;;  %vm3922_vm0 = vnez %v3875_v44  ;;  %v3929_v44 = vld [vmem:[#allocation11_spill] sm:$0xff]  ;;  %vm3835_vm14 = vcmp.eq.s32.totalorder %v3454_v10, 1 }
 0x6c0   :  { %v1352_v59 = vsel %vm3910_vm8, 1e-10, %v1344_v11  ;;  %1669 = vperm.xlu0 %2076, %v1353_v28   ;;  %vm1430_vm3 = vcmp.eq.s32.totalorder %v3929_v44, 1  ;;  %v3934_v11 = vld [vmem:[#allocation18_spill] sm:$0xff] }
 0x6c1   :  { %1664 = vperm.xlu1 %2077, %v1352_v59  }
 0x6c5   :  { %v1297_v43 = vpop.permute.xlu1 %1296 }
 0x6c6   :  { %v1343_v46 = vsel %vm3891_vm12, %v1297_v43, %v3132_v47  ;;  %v1295_v33 = vpop.permute.xlu0 %1294  ;;  %vm1440_vm12 = vmand %vm1430_vm3, %vm3835_vm14  ;;  %v3937_v43 = vld [vmem:[#allocation7_spill] sm:$0xff] }
 0x6c7   :  { %v1351_v62 = vsel %vm3909_vm7, 1e-10, %v1343_v46  ;;  %v1342_v50 = vsel %vm2950_vm6, %v1295_v33, %v3921_v55  ;;  %vm3923_vm6 = vnez %v3862_v60  ;;  %v3928_v60 = vld [vmem:[#allocation14_spill] sm:$0xff]  ;;  %vm1432_vm7 = vcmp.eq.s32.totalorder %v3931_v32, 1  ;;  %v3938_v55 = vld [vmem:[#allocation19_spill] sm:$0xff] }
 0x6c8   :  { %v1350_v53 = vsel %vm3908_vm13, 1e-10, %v1342_v50  ;;  %1659 = vperm.xlu0 %2076, %v1351_v62   ;;  %vm1109_vm13 = vcmp.eq.s32.totalorder %v3454_v10, 3  ;;  %vm1431_vm9 = vcmp.eq.s32.totalorder %v3937_v43, 1  ;;  %v3939_v50 = vld [vmem:[#allocation13_spill] sm:$0xff] }
 0x6c9   :  { %1654 = vperm.xlu1 %2077, %v1350_v53   ;;  %vm1441_vm3 = vmand %vm1431_vm9, %vm3835_vm14 }
 0x6cd   :  { %v1309_v61 = vpop.permute.xlu1 %1308 }
 0x6ce   :  { %v1349_v6 = vsel %vm3071_vm11, %v1309_v61, %v3141_v12  ;;  %v1307_v15 = vpop.permute.xlu0 %1306  ;;  %vm1480_vm11 = vcmp.eq.s32.totalorder %v3928_v60, 1 }
 0x6cf   :  { %v1357_v47 = vsel %vm3020_vm1, 1e-10, %v1349_v6  ;;  %v1348_v48 = vsel %vm3922_vm0, %v1307_v15, %v3144_v19  ;;  %vm1108_vm1 = vcmp.eq.s32.totalorder %v3454_v10, 2 }
 0x6d0   :  { %v1356_v16 = vsel %vm3923_vm6, 1e-10, %v1348_v48  ;;  %1689 = vperm.xlu0 %2076, %v1357_v47   ;;  %vm1490_vm8 = vmand %vm1480_vm11, %vm1108_vm1  ;;  %vm1483_vm11 = vcmp.eq.s32.totalorder %v3938_v55, 1  ;;  %v3942_v47 = vld [vmem:[#allocation15_spill] sm:$0xff] }
 0x6d1   :  { %1684 = vperm.xlu1 %2077, %v1356_v16   ;;  %vm3471_vm10 = vmor %vm1440_vm12, %vm1490_vm8  ;;  %vm1433_vm8 = vcmp.eq.s32.totalorder %v3939_v50, 1 }
 0x6d2   :  { %v1530_v2 = vsel %vm3471_vm10, 0.33333334, %v3290_v49  ;;  %vm1493_vm12 = vmand %vm1483_vm11, %vm1108_vm1 }
 0x6d5   :  { %v1305_v36 = vpop.permute.xlu1 %1304 }
 0x6d6   :  { %v1347_v35 = vsel %vm3046_vm5, %v1305_v36, %v3248_v4  ;;  %v1303_v25 = vpop.permute.xlu0 %1302  ;;  %v3926_v4 = vld [vmem:[#allocation9_spill] sm:$0xff]  ;;  %vm3927_vm5 = vmor %vm3923_vm6, %vm3922_vm0  ;;  %vm1481_vm0 = vcmp.eq.s32.totalorder %v3934_v11, 1 }
 0x6d7   :  { %v1355_v12 = vsel %vm3888_vm15, 1e-10, %v1347_v35  ;;  %v1346_v31 = vsel %vm3919_vm4, %v1303_v25, %v3206_v58  ;;  %v1396_v1 = vsel %vm3927_vm5, 1e-10, %v3926_v4  ;;  %vm1482_vm15 = vcmp.eq.s32.totalorder %v3930_v7, 1  ;;  %vm1442_vm4 = vmand %vm1432_vm7, %vm3835_vm14  ;;  %v3947_v4 = vld [vmem:[#allocation10_spill] sm:$0xff] }
 0x6d8   :  { %v1354_v19 = vsel %vm3918_vm2, 1e-10, %v1346_v31  ;;  %1679 = vperm.xlu0 %2076, %v1355_v12   ;;  %vm1492_vm2 = vmand %vm1482_vm15, %vm1108_vm1  ;;  %vm1485_vm7 = vcmp.eq.s32.totalorder %v3334_v56, 1 }
 0x6d9   :  { %1674 = vperm.xlu1 %2077, %v1354_v19   ;;  %v3448_v13 = vpop.permute.xlu1 %1570  ;;  %vm3488_vm6 = vmor %vm1442_vm4, %vm1492_vm2  ;;  %vm1435_vm4 = vcmp.eq.s32.totalorder %v3942_v47, 1 }
 0x6da   :  { %v1573_v37 = vpop.permute.xlu0 %1572  ;;  %v1532_v49 = vsel %vm3488_vm6, 0.33333334, %v3302_v39  ;;  %vm1491_vm5 = vmand %vm1481_vm0, %vm1108_vm1  ;;  %v1594_v12 = vsel %vm3471_vm10, 0.33333334, %v3448_v13 }
 0x6db   :  { %vm3505_vm15 = vmor %vm1441_vm3, %vm1491_vm5  ;;  %vm1484_vm3 = vcmp.eq.s32.totalorder %v3276_v14, 1 }
 0x6dc   :  { %1737 = vperm.xlu0 %2076, %v1397_v3   ;;  %v1595_v61 = vsel %vm3505_vm15, 0.33333334, %v1573_v37  ;;  %vm1443_vm2 = vmand %vm1433_vm8, %vm3835_vm14  ;;  %vm1434_vm8 = vcmp.eq.s32.totalorder %v3947_v4, 1  ;;  %v3948_v37 = vld [vmem:[#allocation12_spill] sm:$0xff]  ;;  %v1531_v44 = vsel %vm3505_vm15, 0.33333334, %v3373_v0 }
 0x6dd   :  { %1732 = vperm.xlu1 %2077, %v1396_v1   ;;  %v3450_v58 = vpop.permute.xlu1 %1574  ;;  %vm3522_vm0 = vmor %vm1443_vm2, %vm1493_vm12  ;;  %vm1436_vm12 = vcmp.eq.s32.totalorder %v3948_v37, 1 }
 0x6de   :  { %v1577_v45 = vpop.permute.xlu0 %1576  ;;  %vm1495_vm9 = vmand %vm1485_vm7, %vm1108_vm1  ;;  %v1596_v14 = vsel %vm3488_vm6, 0.33333334, %v3450_v58  ;;  %v3951_v58 = vld [vmem:[#allocation17_spill] sm:$0xff] }
 0x6df   :  { %v1597_v56 = vsel %vm3522_vm0, 0.33333334, %v1577_v45  ;;  %vm1445_vm5 = vmand %vm1435_vm4, %vm3835_vm14  ;;  %vm1486_vm4 = vcmp.eq.s32.totalorder %v3280_v18, 1  ;;  %v1533_v45 = vsel %vm3522_vm0, 0.33333334, %v3377_v63 }
 0x6e0   :  { %vm3535_vm11 = vmor %vm1445_vm5, %vm1495_vm9  ;;  %vm1487_vm5 = vcmp.eq.s32.totalorder %v3361_v57, 1 }
 0x6e1   :  { %v3452_v52 = vpop.permute.xlu1 %1578  ;;  %vm1494_vm7 = vmand %vm1484_vm3, %vm1108_vm1  ;;  %vm1437_vm3 = vcmp.eq.s32.totalorder %v3951_v58, 1 }
 0x6e2   :  { %v1581_v41 = vpop.permute.xlu0 %1580  ;;  %vm1444_vm2 = vmand %vm1434_vm8, %vm3835_vm14 }
 0x6e3   :  { %v1599_v19 = vsel %vm3535_vm11, 0.33333334, %v1581_v41  ;;  %vm3568_vm9 = vmand %vm1436_vm12, %vm3835_vm14 }
 0x6e4   :  { %vm3577_vm8 = vmor %vm1444_vm2, %vm1494_vm7  ;;  %vm3954_vm7 = vcmp.eq.s32.totalorder %v3454_v10, 1 }
 0x6e5   :  { %v3461_v26 = vpop.permute.xlu1 %1582  ;;  %vm1496_vm12 = vmand %vm1486_vm4, %vm1108_vm1  ;;  %v1598_v57 = vsel %vm3577_vm8, 0.33333334, %v3452_v52  ;;  %v1534_v43 = vsel %vm3577_vm8, 0.33333334, %v3311_v5  ;;  %v1565_v5 = vsel %vm3522_vm0, 0.33333334, %v3390_v8 }
 0x6e6   :  { %v3465_v34 = vpop.permute.xlu0 %1584  ;;  %vm1497_vm14 = vmand %vm1487_vm5, %vm1108_vm1  ;;  %v1563_v8 = vsel %vm3505_vm15, 0.33333334, %v3388_v22 }
 0x6e7   :  { %vm1447_vm2 = vmand %vm1437_vm3, %vm3954_vm7 }
 0x6e8   :  { %vm3602_vm4 = vmor %vm3568_vm9, %vm1496_vm12 }
 0x6e9   :  { %vm3607_vm1 = vmor %vm1447_vm2, %vm1497_vm14  ;;  %vm1789_vm14 = vcmask 64544  }
 0x6ea   :  { %v1569_v22 = vsel %vm3607_vm1, 0.33333334, %v3394_v20  ;;  %v1567_v20 = vsel %vm3535_vm11, 0.33333334, %v3392_v24  ;;  %v1601_v24 = vsel %vm3607_vm1, 0.33333334, %v3465_v34 }
 0x6f2   :  { %v1607_v30 = vpop.permute.xlu1 %1606 }
 0x6f3   :  { %v3480_v17 = vpop.permute.xlu0 %1611  ;;  %v1644_v28 = vsel %vm1109_vm13, %v1607_v30, %v1530_v2  ;;  %v1536_v30 = vsel %vm3602_vm4, 0.33333334, %v3324_v27  ;;  %v1535_v27 = vsel %vm3535_vm11, 0.33333334, %v3384_v9  ;;  %v1564_v9 = vsel %vm3488_vm6, 0.33333334, %v3353_v23 }
 0x6f4   :  { %1765 = vrot.lane.b32.xlu1 %v1644_v28, %s2210_s13  ;;  %v1645_v52 = vsel %vm1109_vm13, %v3480_v17, %v1531_v44  ;;  %v1537_v17 = vsel %vm3607_vm1, 0.33333334, %v3386_v40  ;;  %v1562_v23 = vsel %vm3471_vm10, 0.33333334, %v3336_v38  ;;  %v1568_v38 = vsel %vm3602_vm4, 0.33333334, %v3375_v42 }
 0x6f5   :  { %v1566_v42 = vsel %vm3577_vm8, 0.33333334, %v3365_v21  ;;  %v1600_v21 = vsel %vm3602_vm4, 0.33333334, %v3461_v26  ;;  %vm1871_vm10 = vcmask 130144  }
 0x6f6   :  { %v1617_v46 = vpop.permute.xlu1 %1616 }
 0x6f7   :  { %v1622_v33 = vpop.permute.xlu0 %1621  ;;  %v1646_v62 = vsel %vm1109_vm13, %v1617_v46, %v1532_v49 }
 0x6f8   :  { %1769 = vrot.lane.b32.xlu1 %v1646_v62, %s2210_s13  ;;  %v1647_v18 = vsel %vm1109_vm13, %v1622_v33, %v1533_v45 }
 0x6fa   :  { %v3509_v39 = vpop.permute.xlu1 %1626 }
 0x6fb   :  { %v1708_v6 = vpop.permute.xlu0 %1707  ;;  %v1648_v40 = vsel %vm1109_vm13, %v3509_v39, %v1534_v43 }
 0x6fc   :  { %v1741_v15 = vsel %vm1109_vm13, %v1708_v6, %v1595_v61 }
 0x6fd   :  { %1849 = vrot.lane.b32.xlu0 %v1741_v15, %s2222_s0 }
 0x6fe   :  { %v1637_v16 = vpop.permute.xlu1 %1636 }
 0x6ff   :  { %v1718_v36 = vpop.permute.xlu0 %1717  ;;  %v1650_v28 = vsel %vm1109_vm13, %v1637_v16, %v1536_v30 }
 0x700   :  { %v1743_v35 = vsel %vm1109_vm13, %v1718_v36, %v1597_v56 }
 0x701   :  { %1853 = vrot.lane.b32.xlu0 %v1743_v35, %s2222_s0 }
 0x702   :  { %v1703_v31 = vpop.permute.xlu1 %1702 }
 0x703   :  { %v1740_v51 = vsel %vm1109_vm13, %v1703_v31, %v1594_v12  ;;  %v1728_v3 = vpop.permute.xlu0 %1727 }
 0x704   :  { %v1745_v1 = vsel %vm1109_vm13, %v1728_v3, %v1599_v19  ;;  %1847 = vrot.lane.b32.xlu1 %v1740_v51, %s2222_s0 }
 0x705   :  { %1857 = vrot.lane.b32.xlu0 %v1745_v1, %s2222_s0 }
 0x706   :  { %v1713_v13 = vpop.permute.xlu1 %1712 }
 0x707   :  { %v1742_v29 = vsel %vm1109_vm13, %v1713_v13, %v1596_v14  ;;  %v1642_v2 = vpop.permute.xlu0 %1641 }
 0x708   :  { %1851 = vrot.lane.b32.xlu1 %v1742_v29, %s2222_s0  ;;  %v1651_v11 = vsel %vm1109_vm13, %v1642_v2, %v1537_v17 }
 0x709   :  { %1771 = vrot.lane.b32.xlu0 %v1647_v18, %s2210_s13 }
 0x70a   :  { %v1723_v60 = vpop.permute.xlu1 %1722 }
 0x70b   :  { %v1744_v7 = vsel %vm1109_vm13, %v1723_v60, %v1598_v57 }
 0x70c   :  { %1855 = vrot.lane.b32.xlu1 %v1744_v7, %s2222_s0 }
 0x70d   :  { %1767 = vrot.lane.b32.xlu0 %v1645_v52, %s2210_s13 }
 0x710   :  { %1777 = vrot.lane.b32.xlu1 %v1650_v28, %s2210_s13 }
 0x711   :  { %1779 = vrot.lane.b32.xlu0 %v1651_v11, %s2210_s13 }
 0x713   :  { %v1632_v49 = vpop.permute.xlu0 %1631 }
 0x714   :  { %1773 = vrot.lane.b32.xlu1 %v1648_v40, %s2210_s13  ;;  %v1649_v46 = vsel %vm1109_vm13, %v1632_v49, %v1535_v27 }
 0x715   :  { %1775 = vrot.lane.b32.xlu0 %v1649_v46, %s2210_s13 }
 0x73b   :  { %v1670_v33 = vpop.permute.xlu0 %1669 }
 0x73c   :  { %v1665_v62 = vpop.permute.xlu1 %1664  ;;  %v1695_v55 = vsel %vm1109_vm13, %v1670_v33, %v1565_v5 }
 0x73d   :  { %v1694_v50 = vsel %vm1109_vm13, %v1665_v62, %v1564_v9  ;;  %1812 = vrot.lane.b32.xlu0 %v1695_v55, %s2213_s28 }
 0x73e   :  { %1810 = vrot.lane.b32.xlu1 %v1694_v50, %s2213_s28 }
 0x743   :  { %v1660_v39 = vpop.permute.xlu0 %1659 }
 0x744   :  { %v1655_v59 = vpop.permute.xlu1 %1654  ;;  %v1693_v61 = vsel %vm1109_vm13, %v1660_v39, %v1563_v8 }
 0x745   :  { %v1692_v6 = vsel %vm1109_vm13, %v1655_v59, %v1562_v23  ;;  %1808 = vrot.lane.b32.xlu0 %v1693_v61, %s2213_s28 }
 0x746   :  { %1806 = vrot.lane.b32.xlu1 %v1692_v6, %s2213_s28 }
 0x74b   :  { %v1690_v53 = vpop.permute.xlu0 %1689 }
 0x74c   :  { %v1685_v54 = vpop.permute.xlu1 %1684  ;;  %v1699_v15 = vsel %vm1109_vm13, %v1690_v53, %v1569_v22 }
 0x74d   :  { %v1698_v47 = vsel %vm1109_vm13, %v1685_v54, %v1568_v38  ;;  %1820 = vrot.lane.b32.xlu0 %v1699_v15, %s2213_s28 }
 0x74e   :  { %1818 = vrot.lane.b32.xlu1 %v1698_v47, %s2213_s28 }
 0x753   :  { %v1680_v48 = vpop.permute.xlu0 %1679 }
 0x754   :  { %v1675_v16 = vpop.permute.xlu1 %1674  ;;  %v1697_v56 = vsel %vm1109_vm13, %v1680_v48, %v1567_v20 }
 0x755   :  { %v1696_v36 = vsel %vm1109_vm13, %v1675_v16, %v1566_v42  ;;  %1816 = vrot.lane.b32.xlu0 %v1697_v56, %s2213_s28 }
 0x756   :  { %1814 = vrot.lane.b32.xlu1 %v1696_v36, %s2213_s28 }
 0x757   :  { %v1738_v35 = vpop.permute.xlu0 %1737 }
 0x758   :  { %v1733_v25 = vpop.permute.xlu1 %1732  ;;  %v1747_v12 = vsel %vm1109_vm13, %v1738_v35, %v1601_v24 }
 0x759   :  { %v1746_v31 = vsel %vm1109_vm13, %v1733_v25, %v1600_v21  ;;  %1861 = vrot.lane.b32.xlu0 %v1747_v12, %s2222_s0  ;;  %vm1830_vm13 = vcmask 97344  }
 0x75a   :  { %1859 = vrot.lane.b32.xlu1 %v1746_v31, %s2222_s0 }
 0x766   :  { %v1766_v19 = vpop.permute.xlu1 %1765 }
 0x767   :  { %1790 = vst.msk [vmem:[%s3801_s9] sm:$0xff] %vm1789_vm14, %v1766_v19 }
 0x76a   :  { %v1770_v34 = vpop.permute.xlu1 %1769 }
 0x76b   :  { %1792 = vst.msk [vmem:[%s3801_s9 + $0x10] sm:$0xff] %vm1789_vm14, %v1770_v34 }
 0x76f   :  { %v1850_v26 = vpop.permute.xlu0 %1849 }
 0x773   :  { %v1854_v10 = vpop.permute.xlu0 %1853 }
 0x776   :  { %v1848_v51 = vpop.permute.xlu1 %1847 }
 0x777   :  { %v1858_v3 = vpop.permute.xlu0 %1857 }
 0x77a   :  { %v1852_v4 = vpop.permute.xlu1 %1851 }
 0x77b   :  { %v1772_v1 = vpop.permute.xlu0 %1771 }
 0x77c   :  { %1793 = vst.msk [vmem:[%s3801_s9 + $0x18] sm:$0xff] %vm1789_vm14, %v1772_v1 }
 0x77e   :  { %v1856_v37 = vpop.permute.xlu1 %1855 }
 0x77f   :  { %v1768_v14 = vpop.permute.xlu0 %1767 }
 0x780   :  { %1791 = vst.msk [vmem:[%s3801_s9 + $0x8] sm:$0xff] %vm1789_vm14, %v1768_v14 }
 0x782   :  { %v1778_v13 = vpop.permute.xlu1 %1777 }
 0x783   :  { %1796 = vst.msk [vmem:[%s3801_s9 + $0x30] sm:$0xff] %vm1789_vm14, %v1778_v13  ;;  %v1780_v45 = vpop.permute.xlu0 %1779 }
 0x784   :  { %1797 = vst.msk [vmem:[%s3801_s9 + $0x38] sm:$0xff] %vm1789_vm14, %v1780_v45 }
 0x786   :  { %v1774_v29 = vpop.permute.xlu1 %1773 }
 0x787   :  { %1794 = vst.msk [vmem:[%s3801_s9 + $0x20] sm:$0xff] %vm1789_vm14, %v1774_v29  ;;  %v1776_v41 = vpop.permute.xlu0 %1775 }
 0x788   :  { %1795 = vst.msk [vmem:[%s3801_s9 + $0x28] sm:$0xff] %vm1789_vm14, %v1776_v41 }
 0x7af   :  { %v1813_v18 = vpop.permute.xlu0 %1812 }
 0x7b0   :  { %v1811_v58 = vpop.permute.xlu1 %1810  ;;  %1834 = vst.msk [vmem:[%s3801_s9 + $0x18] sm:$0xff] %vm1830_vm13, %v1813_v18 }
 0x7b1   :  { %1833 = vst.msk [vmem:[%s3801_s9 + $0x10] sm:$0xff] %vm1830_vm13, %v1811_v58 }
 0x7b2   :  { %1875 = vst.msk [vmem:[%s3801_s9 + $0x18] sm:$0xff] %vm1871_vm10, %v1854_v10  ;;  %1874 = vst.msk [vmem:[%s3801_s9 + $0x10] sm:$0xff] %vm1871_vm10, %v1852_v4 }
 0x7b7   :  { %v1809_v63 = vpop.permute.xlu0 %1808 }
 0x7b8   :  { %v1807_v57 = vpop.permute.xlu1 %1806  ;;  %1832 = vst.msk [vmem:[%s3801_s9 + $0x8] sm:$0xff] %vm1830_vm13, %v1809_v63 }
 0x7b9   :  { %1831 = vst.msk [vmem:[%s3801_s9] sm:$0xff] %vm1830_vm13, %v1807_v57 }
 0x7ba   :  { %1873 = vst.msk [vmem:[%s3801_s9 + $0x8] sm:$0xff] %vm1871_vm10, %v1850_v26  ;;  %1872 = vst.msk [vmem:[%s3801_s9] sm:$0xff] %vm1871_vm10, %v1848_v51 }
 0x7bf   :  { %v1821_v60 = vpop.permute.xlu0 %1820 }
 0x7c0   :  { %v1819_v44 = vpop.permute.xlu1 %1818  ;;  %1838 = vst.msk [vmem:[%s3801_s9 + $0x38] sm:$0xff] %vm1830_vm13, %v1821_v60 }
 0x7c1   :  { %1837 = vst.msk [vmem:[%s3801_s9 + $0x30] sm:$0xff] %vm1830_vm13, %v1819_v44 }
 0x7c7   :  { %v1817_v7 = vpop.permute.xlu0 %1816 }
 0x7c8   :  { %v1815_v52 = vpop.permute.xlu1 %1814  ;;  %1836 = vst.msk [vmem:[%s3801_s9 + $0x28] sm:$0xff] %vm1830_vm13, %v1817_v7 }
 0x7c9   :  { %1835 = vst.msk [vmem:[%s3801_s9 + $0x20] sm:$0xff] %vm1830_vm13, %v1815_v52 }
 0x7ca   :  { %1877 = vst.msk [vmem:[%s3801_s9 + $0x28] sm:$0xff] %vm1871_vm10, %v1858_v3  ;;  %1876 = vst.msk [vmem:[%s3801_s9 + $0x20] sm:$0xff] %vm1871_vm10, %v1856_v37 }
 0x7cb   :  { %v1862_v32 = vpop.permute.xlu0 %1861 }
 0x7cc   :  { %v1860_v2 = vpop.permute.xlu1 %1859  ;;  %1879 = vst.msk [vmem:[%s3801_s9 + $0x38] sm:$0xff] %vm1871_vm10, %v1862_v32 }
 0x7cd   :  { %1878 = vst.msk [vmem:[%s3801_s9 + $0x30] sm:$0xff] %vm1871_vm10, %v1860_v2 }
 0x7ce   :  { %1884 = vsyncpa [#allocation3], 1 }

</bundles_post_ra>
